<compile_context>
chip_gen: v7x
topology: tpu7x:2x2x1
jax: 0.10.0
libtpu: 0.0.40
codegen_flags: <defaults>
</compile_context>

<pallas_src>
import jax
import jax.numpy as jnp
from jax.experimental import pallas as pl
from jax.experimental.pallas import tpu as pltpu


_HEAD_CHUNK = 512  # lanes per head-matmul column chunk (bounds vreg live range)


# ---------------------------------------------------------------------------
# Kernel
# ---------------------------------------------------------------------------
def generator_kernel(x_ref, *refs):
    """(Linear -> Tanh -> Dropout[id])* MLP followed by the fused linear head.

    refs = [w1, b1, ..., wL, bL, w_head, b_head, head_out]
    One batch block (TB rows) per grid step.  The head output is a lane-dense
    (TB, V*V*E + V*Nn) slab; edge logits are already symmetrized + permuted to
    (V, V, E) order by the pre-baked head weights, so no in-kernel shuffles.
    """
    head_ref = refs[-1]
    w_refs = refs[:-1]
    n_mlp = (len(w_refs) - 2) // 2

    h = x_ref[...]                                            # (TB, z_dim) f32
    for l in range(n_mlp):
        w = w_refs[2 * l][...]
        b = w_refs[2 * l + 1][...]                            # f32 bias
        h = jnp.tanh(jnp.dot(h.astype(w.dtype), w,
                             preferred_element_type=jnp.float32) + b)
        # TODO(synk): nn.Dropout is identity at inference; no in-kernel RNG dropout.

    w_head_ref, b_head_ref = w_refs[-2], w_refs[-1]
    h = h.astype(w_head_ref.dtype)
    width = w_head_ref.shape[1]
    # Chunk the wide head matmul over static column slices (multiples of 128)
    # so the live f32 result tile stays inside the 64-vreg file at TB >= 128.
    c0 = 0
    while c0 < width:
        cw = min(_HEAD_CHUNK, width - c0)
        head_ref[:, c0:c0 + cw] = (
            jnp.dot(h, w_head_ref[:, c0:c0 + cw],
                    preferred_element_type=jnp.float32)
            + b_head_ref[:, c0:c0 + cw])
        c0 += cw


# ---------------------------------------------------------------------------
# One-time parameter preprocessing (hoisted out of the forward hot path)
# ---------------------------------------------------------------------------
def bake_generator_params(params, *, vertexes, edges, nodes,
                          param_dtype=jnp.float32):
    """Bake symmetrization/permutation into the edge head and fuse the two heads.

    torch semantics baked in (both are linear, so this is exact):
        L.view(B,E,V,V); (L + L.permute(0,1,3,2))/2; permute(0,2,3,1) -> (B,V,V,E)
    Returns a flat tuple: (w1, b1, ..., wL, bL, w_head, b_head).
    Weights optionally cast to `param_dtype` (bf16); biases kept in f32.
    """
    mlp, (we, be), (wn, bn) = params
    V, E, Nn = vertexes, edges, nodes
    C = we.shape[0]

    we4 = we.astype(jnp.float32).reshape(C, E, V, V)
    we_sym = 0.5 * (we4 + jnp.swapaxes(we4, 2, 3))
    we_k = jnp.transpose(we_sym, (0, 2, 3, 1)).reshape(C, V * V * E)
    be3 = be.astype(jnp.float32).reshape(E, V, V)
    be_sym = 0.5 * (be3 + jnp.swapaxes(be3, 1, 2))
    be_k = jnp.transpose(be_sym, (1, 2, 0)).reshape(1, V * V * E)

    w_head = jnp.concatenate([we_k, wn.astype(jnp.float32)], axis=1)
    b_head = jnp.concatenate([be_k, bn.astype(jnp.float32).reshape(1, -1)],
                             axis=1)

    baked = []
    for (w, b) in mlp:
        baked += [w.astype(param_dtype), b.astype(jnp.float32).reshape(1, -1)]
    baked += [w_head.astype(param_dtype), b_head]
    return tuple(baked)


# ---------------------------------------------------------------------------
# Batch-block sizing (per TPU generation)
# ---------------------------------------------------------------------------
def _num_tensorcores_per_chip():
    # v7x chips have 2 TensorCores; v5e/v6e have 1.  Fall back to 1 if unknown.
    try:
        kind = (jax.devices()[0].device_kind or "").lower()
    except Exception:
        return 1
    return 2 if ("v7" in kind or "7x" in kind) else 1


def _choose_block_b(batch, n_tc):
    tb = -(-batch // n_tc)           # whole (per-core) batch in one grid step
    tb = min(tb, 256)                # 256 rows fills the v6e/v7x MXU M dimension
    tb = max(8, ((tb + 7) // 8) * 8)
    return tb


# ---------------------------------------------------------------------------
# Forward wrapper
# ---------------------------------------------------------------------------
def generator_forward(x, baked_params, *, vertexes, edges, nodes, block_b=None):
    B, z_dim = x.shape
    V, E, Nn = vertexes, edges, nodes
    width = V * V * E + V * Nn

    if block_b is None:
        block_b = _choose_block_b(B, _num_tensorcores_per_chip())
    TB = block_b
    B_pad = ((B + TB - 1) // TB) * TB
    if B_pad != B:
        x = jnp.pad(x, ((0, B_pad - B), (0, 0)))

    def full_spec(arr):
        nd = arr.ndim
        # Constant index_map -> Pallas does not re-fetch these across grid steps.
        # (pl.Buffered(1) single-buffering skipped: VMEM headroom is ample at
        #  these sizes and default buffering is the known-good path.)
        return pl.BlockSpec(arr.shape, lambda b, nd=nd: (0,) * nd)

    in_specs = ([pl.BlockSpec((TB, z_dim), lambda b: (b, 0))]
                + [full_spec(w) for w in baked_params])
    out_specs = pl.BlockSpec((TB, width), lambda b: (b, 0))
    out_shape = jax.ShapeDtypeStruct((B_pad, width), jnp.float32)

    head = pl.pallas_call(
        generator_kernel,
        out_shape=out_shape,
        grid_spec=pltpu.PrefetchScalarGridSpec(
            num_scalar_prefetch=0,
            grid=(B_pad // TB,),
            in_specs=in_specs,
            out_specs=out_specs),
        compiler_params=pltpu.CompilerParams(
            dimension_semantics=("parallel",)),
    )(x, *baked_params)

    edges_logits = head[:B, :V * V * E].reshape(B, V, V, E)  # already permuted
    nodes_logits = head[:B, V * V * E:].reshape(B, V, Nn)
    return edges_logits, nodes_logits


# ---------------------------------------------------------------------------
# Pure-JAX reference (mirrors the PyTorch forward in eval mode)
# ---------------------------------------------------------------------------
def ref_forward(x, params, *, vertexes, edges, nodes):
    mlp, (we, be), (wn, bn) = params
    hp = jax.lax.Precision.HIGHEST
    h = x
    for (w, b) in mlp:
        h = jnp.tanh(jnp.dot(h, w, precision=hp) + b)
    e = jnp.dot(h, we, precision=hp) + be
    e = e.reshape(-1, edges, vertexes, vertexes)
    e = 0.5 * (e + jnp.transpose(e, (0, 1, 3, 2)))
    e = jnp.transpose(e, (0, 2, 3, 1))
    n = (jnp.dot(h, wn, precision=hp) + bn).reshape(-1, vertexes, nodes)
    return e, n


if __name__ == "__main__":
    key = jax.random.PRNGKey(0)
    B = 128
    z_dim = 32
    conv_dims = [64, 128]
    vertexes, edges, nodes = 16, 4, 8

    dims = [z_dim] + conv_dims
    keys = jax.random.split(key, 2 * len(conv_dims) + 4 + 1)

    def init(k, shape, scale=0.1):
        return scale * jax.random.normal(k, shape, jnp.float32)

    mlp = []
    ki = 0
    for c0, c1 in zip(dims[:-1], dims[1:]):
        w = init(keys[ki], (c0, c1)); ki += 1
        b = init(keys[ki], (c1,)); ki += 1
        mlp.append((w, b))
    C = conv_dims[-1]
    we = init(keys[ki], (C, edges * vertexes * vertexes)); ki += 1
    be = init(keys[ki], (edges * vertexes * vertexes,)); ki += 1
    wn = init(keys[ki], (C, vertexes * nodes)); ki += 1
    bn = init(keys[ki], (vertexes * nodes,)); ki += 1
    params = (mlp, (we, be), (wn, bn))

    x = jax.random.normal(keys[ki], (B, z_dim), jnp.float32)

    # One-time baking (hoisted out of the hot path).
    baked_f32 = bake_generator_params(params, vertexes=vertexes, edges=edges,
                                      nodes=nodes, param_dtype=jnp.float32)

    e_out, n_out = generator_forward(x, baked_f32, vertexes=vertexes,
                                     edges=edges, nodes=nodes)
    jax.block_until_ready((e_out, n_out))

    e_ref, n_ref = ref_forward(x, params, vertexes=vertexes, edges=edges,
                               nodes=nodes)
    assert e_out.shape == (B, vertexes, vertexes, edges)
    assert n_out.shape == (B, vertexes, nodes)
    assert jnp.max(jnp.abs(e_out - e_ref)) < 1e-3
    assert jnp.max(jnp.abs(n_out - n_ref)) < 1e-3
    # Edge logits must be symmetric over the two vertex axes (module semantics).
    assert jnp.max(jnp.abs(e_out - jnp.transpose(e_out, (0, 2, 1, 3)))) < 1e-5

    # Optional bf16-operand path (MXU-native on v6e/v7x, halves weight DMA);
    # validated at a looser tolerance per the review's correctness caveat.
    baked_bf16 = bake_generator_params(params, vertexes=vertexes, edges=edges,
                                       nodes=nodes, param_dtype=jnp.bfloat16)
    e_bf, n_bf = generator_forward(x, baked_bf16, vertexes=vertexes,
                                   edges=edges, nodes=nodes)
    jax.block_until_ready((e_bf, n_bf))
    assert jnp.max(jnp.abs(e_bf - e_ref)) < 5e-2
    assert jnp.max(jnp.abs(n_bf - n_ref)) < 5e-2

    print("KERNEL_OK")
</pallas_src>

<mosaic_0001>
module attributes {stable_mosaic.version = 11 : i64} {
  func.func @generator_kernel(%arg0: i32, %arg1: memref<128x32xf32, #tpu.memory_space<vmem>>, %arg2: memref<32x64xf32, #tpu.memory_space<vmem>>, %arg3: memref<1x64xf32, #tpu.memory_space<vmem>>, %arg4: memref<64x128xf32, #tpu.memory_space<vmem>>, %arg5: memref<1x128xf32, #tpu.memory_space<vmem>>, %arg6: memref<128x1152xf32, #tpu.memory_space<vmem>>, %arg7: memref<1x1152xf32, #tpu.memory_space<vmem>>, %arg8: memref<128x1152xf32, #tpu.memory_space<vmem>>) attributes {dimension_semantics = [#tpu.dimension_semantics<parallel>], iteration_bounds = array<i64: 1>, scalar_prefetch = 0 : i64, scratch_operands = 0 : i64, tpu.core_type = #tpu.core_type<tc>, window_params = [{transform_indices = @transform_0, window_bounds = array<i64: 128, 32>}, {pipeline_mode = #tpu.pipeline_mode<synchronous>, transform_indices = @transform_1, window_bounds = array<i64: 32, 64>}, {pipeline_mode = #tpu.pipeline_mode<synchronous>, transform_indices = @transform_2, window_bounds = array<i64: 1, 64>}, {pipeline_mode = #tpu.pipeline_mode<synchronous>, transform_indices = @transform_3, window_bounds = array<i64: 64, 128>}, {pipeline_mode = #tpu.pipeline_mode<synchronous>, transform_indices = @transform_4, window_bounds = array<i64: 1, 128>}, {pipeline_mode = #tpu.pipeline_mode<synchronous>, transform_indices = @transform_5, window_bounds = array<i64: 128, 1152>}, {pipeline_mode = #tpu.pipeline_mode<synchronous>, transform_indices = @transform_6, window_bounds = array<i64: 1, 1152>}, {transform_indices = @transform_7, window_bounds = array<i64: 128, 1152>}]} {
    %c0 = arith.constant 0 : index
    %c0_0 = arith.constant 0 : index
    %0 = vector.load %arg1[%c0, %c0_0] : memref<128x32xf32, #tpu.memory_space<vmem>>, vector<128x32xf32>
    %c0_1 = arith.constant 0 : index
    %c0_2 = arith.constant 0 : index
    %1 = vector.load %arg2[%c0_1, %c0_2] : memref<32x64xf32, #tpu.memory_space<vmem>>, vector<32x64xf32>
    %c0_3 = arith.constant 0 : index
    %c0_4 = arith.constant 0 : index
    %2 = vector.load %arg3[%c0_3, %c0_4] : memref<1x64xf32, #tpu.memory_space<vmem>>, vector<1x64xf32>
    %cst = arith.constant dense<0.000000e+00> : vector<128x64xf32>
    %3 = tpu.matmul %0, %1, %cst {dimension_numbers = #tpu.dot_dimension_numbers<[1], [0], [0], [1], [0, 0, 1, 1], [], []>} : vector<128x32xf32>, vector<32x64xf32>, vector<128x64xf32> -> vector<128x64xf32>
    %4 = vector.broadcast %2 : vector<1x64xf32> to vector<128x64xf32>
    %5 = arith.addf %3, %4 : vector<128x64xf32>
    %6 = math.tanh %5 : vector<128x64xf32>
    %c0_5 = arith.constant 0 : index
    %c0_6 = arith.constant 0 : index
    %7 = vector.load %arg4[%c0_5, %c0_6] : memref<64x128xf32, #tpu.memory_space<vmem>>, vector<64x128xf32>
    %c0_7 = arith.constant 0 : index
    %c0_8 = arith.constant 0 : index
    %8 = vector.load %arg5[%c0_7, %c0_8] : memref<1x128xf32, #tpu.memory_space<vmem>>, vector<1x128xf32>
    %cst_9 = arith.constant dense<0.000000e+00> : vector<128x128xf32>
    %9 = tpu.matmul %6, %7, %cst_9 {dimension_numbers = #tpu.dot_dimension_numbers<[1], [0], [0], [1], [0, 0, 1, 1], [], []>} : vector<128x64xf32>, vector<64x128xf32>, vector<128x128xf32> -> vector<128x128xf32>
    %10 = vector.broadcast %8 : vector<1x128xf32> to vector<128x128xf32>
    %11 = arith.addf %9, %10 : vector<128x128xf32>
    %12 = math.tanh %11 : vector<128x128xf32>
    %c0_10 = arith.constant 0 : index
    %c0_11 = arith.constant 0 : index
    %13 = vector.load %arg6[%c0_10, %c0_11] : memref<128x1152xf32, #tpu.memory_space<vmem>>, vector<128x512xf32>
    %cst_12 = arith.constant dense<0.000000e+00> : vector<128x512xf32>
    %14 = tpu.matmul %12, %13, %cst_12 {dimension_numbers = #tpu.dot_dimension_numbers<[1], [0], [0], [1], [0, 0, 1, 1], [], []>} : vector<128x128xf32>, vector<128x512xf32>, vector<128x512xf32> -> vector<128x512xf32>
    %c0_13 = arith.constant 0 : index
    %c0_14 = arith.constant 0 : index
    %15 = vector.load %arg7[%c0_13, %c0_14] : memref<1x1152xf32, #tpu.memory_space<vmem>>, vector<1x512xf32>
    %16 = vector.broadcast %15 : vector<1x512xf32> to vector<128x512xf32>
    %17 = arith.addf %14, %16 : vector<128x512xf32>
    %c0_15 = arith.constant 0 : index
    %c0_16 = arith.constant 0 : index
    %18 = vector.load %arg8[%c0_15, %c0_16] : memref<128x1152xf32, #tpu.memory_space<vmem>>, vector<128x512xf32>
    tpu.vector_store %arg8[%c0_15, %c0_16], %17 {strides = array<i32>} : memref<128x1152xf32, #tpu.memory_space<vmem>>, vector<128x512xf32>,
    %c0_17 = arith.constant 0 : index
    %c512 = arith.constant 512 : index
    %19 = vector.load %arg6[%c0_17, %c512] : memref<128x1152xf32, #tpu.memory_space<vmem>>, vector<128x512xf32>
    %cst_18 = arith.constant dense<0.000000e+00> : vector<128x512xf32>
    %20 = tpu.matmul %12, %19, %cst_18 {dimension_numbers = #tpu.dot_dimension_numbers<[1], [0], [0], [1], [0, 0, 1, 1], [], []>} : vector<128x128xf32>, vector<128x512xf32>, vector<128x512xf32> -> vector<128x512xf32>
    %c0_19 = arith.constant 0 : index
    %c512_20 = arith.constant 512 : index
    %21 = vector.load %arg7[%c0_19, %c512_20] : memref<1x1152xf32, #tpu.memory_space<vmem>>, vector<1x512xf32>
    %22 = vector.broadcast %21 : vector<1x512xf32> to vector<128x512xf32>
    %23 = arith.addf %20, %22 : vector<128x512xf32>
    %c0_21 = arith.constant 0 : index
    %c512_22 = arith.constant 512 : index
    %24 = vector.load %arg8[%c0_21, %c512_22] : memref<128x1152xf32, #tpu.memory_space<vmem>>, vector<128x512xf32>
    tpu.vector_store %arg8[%c0_21, %c512_22], %23 {strides = array<i32>} : memref<128x1152xf32, #tpu.memory_space<vmem>>, vector<128x512xf32>,
    %c0_23 = arith.constant 0 : index
    %c1024 = arith.constant 1024 : index
    %25 = vector.load %arg6[%c0_23, %c1024] : memref<128x1152xf32, #tpu.memory_space<vmem>>, vector<128x128xf32>
    %cst_24 = arith.constant dense<0.000000e+00> : vector<128x128xf32>
    %26 = tpu.matmul %12, %25, %cst_24 {dimension_numbers = #tpu.dot_dimension_numbers<[1], [0], [0], [1], [0, 0, 1, 1], [], []>} : vector<128x128xf32>, vector<128x128xf32>, vector<128x128xf32> -> vector<128x128xf32>
    %c0_25 = arith.constant 0 : index
    %c1024_26 = arith.constant 1024 : index
    %27 = vector.load %arg7[%c0_25, %c1024_26] : memref<1x1152xf32, #tpu.memory_space<vmem>>, vector<1x128xf32>
    %28 = vector.broadcast %27 : vector<1x128xf32> to vector<128x128xf32>
    %29 = arith.addf %26, %28 : vector<128x128xf32>
    %c0_27 = arith.constant 0 : index
    %c1024_28 = arith.constant 1024 : index
    %30 = vector.load %arg8[%c0_27, %c1024_28] : memref<128x1152xf32, #tpu.memory_space<vmem>>, vector<128x128xf32>
    tpu.vector_store %arg8[%c0_27, %c1024_28], %29 {strides = array<i32>} : memref<128x1152xf32, #tpu.memory_space<vmem>>, vector<128x128xf32>,
    return
  }
  func.func @transform_0(%arg0: i32) -> (i32, i32) {
    %c0_i32 = arith.constant 0 : i32
    %c0_i32_0 = arith.constant 0 : i32
    return %arg0, %c0_i32 : i32, i32
  }
  func.func @transform_1(%arg0: i32) -> (i32, i32) {
    %c0_i32 = arith.constant 0 : i32
    %c0_i32_0 = arith.constant 0 : i32
    %c0_i32_1 = arith.constant 0 : i32
    return %c0_i32, %c0_i32_0 : i32, i32
  }
  func.func @transform_2(%arg0: i32) -> (i32, i32) {
    %c0_i32 = arith.constant 0 : i32
    %c0_i32_0 = arith.constant 0 : i32
    %c0_i32_1 = arith.constant 0 : i32
    return %c0_i32, %c0_i32_0 : i32, i32
  }
  func.func @transform_3(%arg0: i32) -> (i32, i32) {
    %c0_i32 = arith.constant 0 : i32
    %c0_i32_0 = arith.constant 0 : i32
    %c0_i32_1 = arith.constant 0 : i32
    return %c0_i32, %c0_i32_0 : i32, i32
  }
  func.func @transform_4(%arg0: i32) -> (i32, i32) {
    %c0_i32 = arith.constant 0 : i32
    %c0_i32_0 = arith.constant 0 : i32
    %c0_i32_1 = arith.constant 0 : i32
    return %c0_i32, %c0_i32_0 : i32, i32
  }
  func.func @transform_5(%arg0: i32) -> (i32, i32) {
    %c0_i32 = arith.constant 0 : i32
    %c0_i32_0 = arith.constant 0 : i32
    %c0_i32_1 = arith.constant 0 : i32
    return %c0_i32, %c0_i32_0 : i32, i32
  }
  func.func @transform_6(%arg0: i32) -> (i32, i32) {
    %c0_i32 = arith.constant 0 : i32
    %c0_i32_0 = arith.constant 0 : i32
    %c0_i32_1 = arith.constant 0 : i32
    return %c0_i32, %c0_i32_0 : i32, i32
  }
  func.func @transform_7(%arg0: i32) -> (i32, i32) {
    %c0_i32 = arith.constant 0 : i32
    %c0_i32_0 = arith.constant 0 : i32
    return %arg0, %c0_i32 : i32, i32
  }
}

</mosaic_0001>

<bundles_post_ra>
// kernel: tpu_custom_call.1
= control target key start
LH: loop header
LB: loop body
LE: loop exit
PB: predicated region body
PF: predicated region fallthrough
CT: control target
= control target key end

     0   :  { %12 = vsyncpa [#allocation3], 0  ;;  %s2824_s0 = inlined_call_operand.vmem [shape: f32[128,32], index: 0, kind: input, shape index: {}]   ;;  %s2825_s1 = inlined_call_operand.vmem [shape: f32[32,64], index: 1, kind: input, shape index: {}]   ;;  %s2826_s2 = inlined_call_operand.vmem [shape: f32[1,64], index: 2, kind: input, shape index: {}]   ;;  %s2827_s3 = inlined_call_operand.vmem [shape: f32[64,128], index: 3, kind: input, shape index: {}]   ;;  %s2828_s4 = inlined_call_operand.vmem [shape: f32[1,128], index: 4, kind: input, shape index: {}]   ;;  %s2829_s5 = inlined_call_operand.hbm [shape: f32[128,1152], index: 5, kind: input, shape index: {}]   ;;  %s2830_s6 = inlined_call_operand.vmem [shape: f32[1,1152], index: 6, kind: input, shape index: {}]   ;;  %s2831_s7 = inlined_call_operand.hbm [shape: f32[128,1152], index: 7, kind: output, shape index: {}]  }
   0x1   :  { %13 = vsyncpa [#allocation4], 0  ;;  %s2204_s24 = smov [#allocation2]   ;;  %s2156_s28 = scalar_lea.hbm %s2829_s5, 18432 }
   0x2   :  { %s29_s25 = sshll.u32 %s2204_s24, 4  ;;  %p2157_p0 = scmp.ne.s32.totalorder %s2829_s5, %s2156_s28  ;;  %s30_s25 = int_to_ptr.vmem [resolvable:$true] %s29_s25 }
   0x3   :  { %p2160_p1 = scmp.lt.u32.totalorder %s2156_s28, %s2829_s5 }
   0x5   :  { %p2162_p2 = pnand %p2160_p1, %p2157_p0 }
   0x7   :  { %2165 = shalt.err (!%p2162_p2)
}
   0x8   :  { %s2166_s10 = scalar_lea.vmem %s30_s25, 18432  ;;  %p2171_p4 = scmp.lt.s32.totalorder %s30_s25, %s30_s25 }
   0x9   :  { %p2167_p3 = scmp.ne.s32.totalorder %s30_s25, %s2166_s10  ;;  %p2172_p5 = scmp.lt.s32.totalorder %s2166_s10, %s2166_s10 }
   0xb   :  { %p2173_p6 = por %p2172_p5, %p2171_p4 }
   0xd   :  { %p2174_p7 = pnand %p2173_p6, %p2167_p3 }
   0xf   :  { %2177 = shalt.err (!%p2174_p7)
}
  0x10   :  { %s2205_s11 = smov 1152   ;;  %s2206_s12 = smov 72  }
  0x11   :  { %35 = dma.hbm_to_vmem [thread:$0]  %s2829_s5, 18432, %s30_s25, [#allocation3], %s2205_s11, %s2205_s11, %s2206_s12  }
  0x12   :  { %2200 = dma.done.wait [#allocation3], 18432  }
  0x13   :  { %2201 = vsyncadd [#allocation3], 4294948864  ;;  %vm68_vm0 = vcmask 261120   ;;  %v57_v0 = vld [vmem:[%s2825_s1] sm:$0xff]  ;;  %v58_v1 = vld [vmem:[%s2825_s1 + $0x8] sm:$0xff]  ;;  %vm293_vm1 = vcmask 523264  }
  0x14   :  { %v59_v2 = vld [vmem:[%s2825_s1 + $0x10] sm:$0xff]  ;;  %v1887_v3 = vpack.c.bf16 %v58_v1, %v57_v0  ;;  %v60_v4 = vld [vmem:[%s2825_s1 + $0x18] sm:$0xff]  ;;  %v41_v5 = vld [vmem:[%s2824_s0] sm:$0xff] }
  0x15   :  { %v1891_v6 = vpack.c.bf16 %v60_v4, %v59_v2  ;;  %1767 = vmatprep.mubr.msk.f32.mxu0 %vm68_vm0, %v41_v5  ;;  %v42_v7 = vld [vmem:[%s2824_s0 + $0x8] sm:$0xff]  ;;  %v43_v8 = vld [vmem:[%s2824_s0 + $0x10] sm:$0xff]  ;;  %v44_v9 = vld [vmem:[%s2824_s0 + $0x18] sm:$0xff] }
  0x16   :  { %1888 = vmatprep.subr.bf16.mxu0 %v1887_v3  ;;  %v45_v10 = vld [vmem:[%s2824_s0 + $0x20] sm:$0xff]  ;;  %v46_v11 = vld [vmem:[%s2824_s0 + $0x28] sm:$0xff]  ;;  %v47_v12 = vld [vmem:[%s2824_s0 + $0x30] sm:$0xff] }
  0x17   :  { %1890 = vmatpush3.bf16.msra.mxu0 %v1887_v3  ;;  %v48_v13 = vld [vmem:[%s2824_s0 + $0x38] sm:$0xff]  ;;  %v49_v14 = vld [vmem:[%s2824_s0 + $0x40] sm:$0xff]  ;;  %v50_v15 = vld [vmem:[%s2824_s0 + $0x48] sm:$0xff] }
  0x18   :  { %1892 = vmatprep.subr.bf16.mxu0 %v1891_v6  ;;  %v51_v16 = vld [vmem:[%s2824_s0 + $0x50] sm:$0xff]  ;;  %v52_v17 = vld [vmem:[%s2824_s0 + $0x58] sm:$0xff]  ;;  %v53_v18 = vld [vmem:[%s2824_s0 + $0x60] sm:$0xff] }
  0x19   :  { %v54_v19 = vld [vmem:[%s2824_s0 + $0x68] sm:$0xff]  ;;  %v55_v20 = vld [vmem:[%s2824_s0 + $0x70] sm:$0xff]  ;;  %v56_v21 = vld [vmem:[%s2824_s0 + $0x78] sm:$0xff] }
  0x1a   :  { %v278_v22 = vld [vmem:[%s2827_s3] sm:$0xff]  ;;  %v279_v23 = vld [vmem:[%s2827_s3 + $0x8] sm:$0xff]  ;;  %v280_v25 = vld [vmem:[%s2827_s3 + $0x10] sm:$0xff] }
  0x1b   :  { %1894 = vmatpush3.bf16.msra.mxu0 %v1891_v6  ;;  %v1895_v24 = vpack.c.bf16 %v279_v23, %v278_v22  ;;  %v281_v26 = vld [vmem:[%s2827_s3 + $0x18] sm:$0xff]  ;;  %v282_v28 = vld [vmem:[%s2827_s3 + $0x20] sm:$0xff]  ;;  %v283_v29 = vld [vmem:[%s2827_s3 + $0x28] sm:$0xff] }
  0x1c   :  { %v1899_v27 = vpack.c.bf16 %v281_v26, %v280_v25  ;;  %v1903_v30 = vpack.c.bf16 %v283_v29, %v282_v28  ;;  %v284_v31 = vld [vmem:[%s2827_s3 + $0x30] sm:$0xff]  ;;  %v285_v32 = vld [vmem:[%s2827_s3 + $0x38] sm:$0xff]  ;;  %v504_v34 = vld [vmem:[#allocation2 + $0x8] sm:$0xff] }
  0x1d   :  { %1896 = vmatprep.subr.bf16.mxu1 %v1895_v24  ;;  %v1907_v33 = vpack.c.bf16 %v285_v32, %v284_v31  ;;  %v508_v35 = vld [vmem:[#allocation2 + $0x50] sm:$0xff]  ;;  %v503_v36 = vld [vmem:[#allocation2] sm:$0xff]  ;;  %v507_v38 = vld [vmem:[#allocation2 + $0x48] sm:$0xff] }
  0x1e   :  { %1768 = vmatmul.mubr.msk.f32.vlgmr.msra.gmra.mrb[0].mxu0 %vm68_vm0, %v42_v7  ;;  %1898 = vmatpush3.bf16.msra.mxu1 %v1895_v24  ;;  %v1911_v37 = vpack.c.bf16 %v508_v35, %v504_v34  ;;  %v506_v39 = vld [vmem:[#allocation2 + $0x18] sm:$0xff]  ;;  %v510_v40 = vld [vmem:[#allocation2 + $0x60] sm:$0xff]  ;;  %v1913_v41 = vpack.c.bf16 %v507_v38, %v503_v36  ;;  %v511_v45 = vld [vmem:[#allocation2 + $0x90] sm:$0xff] }
  0x1f   :  { %1770 = vmatprep.mubr.msk.f32.mxu0 %vm68_vm0, %v43_v8  ;;  %1900 = vmatprep.subr.bf16.mxu1 %v1899_v27  ;;  %v1943_v42 = vpack.c.bf16 %v510_v40, %v506_v39  ;;  %v512_v43 = vld [vmem:[#allocation2 + $0x98] sm:$0xff]  ;;  %v516_v44 = vld [vmem:[#allocation2 + $0xe0] sm:$0xff]  ;;  %v520_v49 = vld [vmem:[#allocation2 + $0x128] sm:$0xff] }
  0x20   :  { %1912 = vmatprep.subr.bf16.mxu0 %v1911_v37  ;;  %v515_v46 = vld [vmem:[#allocation2 + $0xd8] sm:$0xff]  ;;  %v1915_v47 = vpack.c.bf16 %v516_v44, %v512_v43  ;;  %v524_v50 = vld [vmem:[#allocation2 + $0x170] sm:$0xff]  ;;  %v519_v52 = vld [vmem:[#allocation2 + $0x120] sm:$0xff] }
  0x21   :  { %1914 = vmatpush1.bf16.msra.mxu0 %v1913_v41  ;;  %v1917_v48 = vpack.c.bf16 %v515_v46, %v511_v45  ;;  %v1919_v51 = vpack.c.bf16 %v524_v50, %v520_v49  ;;  %v523_v53 = vld [vmem:[#allocation2 + $0x168] sm:$0xff]  ;;  %v528_v55 = vld [vmem:[#allocation2 + $0x1b8] sm:$0xff]  ;;  %v532_v56 = vld [vmem:[#allocation2 + $0x200] sm:$0xff] }
  0x22   :  { %1771 = vmatmul.mubr.msk.f32.gmra.mrb[2].mxu0 %vm68_vm0, %v44_v9  ;;  %1902 = vmatpush3.bf16.msra.mxu1 %v1899_v27  ;;  %v1921_v54 = vpack.c.bf16 %v523_v53, %v519_v52  ;;  %v1923_v57 = vpack.c.bf16 %v532_v56, %v528_v55  ;;  %v527_v58 = vld [vmem:[#allocation2 + $0x1b0] sm:$0xff]  ;;  %v531_v59 = vld [vmem:[#allocation2 + $0x1f8] sm:$0xff]  ;;  %v536_v60 = vld [vmem:[#allocation2 + $0x248] sm:$0xff] }
  0x23   :  { %1773 = vmatprep.mubr.msk.f32.mxu0 %vm68_vm0, %v45_v10  ;;  %1904 = vmatprep.subr.bf16.mxu1 %v1903_v30  ;;  %v540_v61 = vld [vmem:[#allocation2 + $0x290] sm:$0xff]  ;;  %v1925_v62 = vpack.c.bf16 %v531_v59, %v527_v58  ;;  %v535_v0 = vld [vmem:[#allocation2 + $0x240] sm:$0xff]  ;;  %v539_v1 = vld [vmem:[#allocation2 + $0x288] sm:$0xff] }
  0x24   :  { %1916 = vmatprep.subr.bf16.mxu0 %v1915_v47  ;;  %v1927_v63 = vpack.c.bf16 %v540_v61, %v536_v60  ;;  %v1929_v2 = vpack.c.bf16 %v539_v1, %v535_v0  ;;  %v2367_v3 = vld [vmem:[%s2826_s2] ss:$0 sm:$0xff]  ;;  %v517_v28 = vld [vmem:[#allocation2 + $0xe8] sm:$0xff]  ;;  %v521_v40 = vld [vmem:[#allocation2 + $0x130] sm:$0xff] }
  0x25   :  { %1918 = vmatpush1.bf16.msra.mxu0 %v1917_v48  ;;  %v513_v27 = vld [vmem:[#allocation2 + $0xa0] sm:$0xff]  ;;  %v525_v41 = vld [vmem:[#allocation2 + $0x178] sm:$0xff]  ;;  %v534_v43 = vld [vmem:[#allocation2 + $0x210] sm:$0xff] }
  0x26   :  { %1774 = vmatmul.mubr.msk.f32.gmra.mrb[4].mxu0 %vm68_vm0, %v46_v11  ;;  %1906 = vmatpush3.bf16.msra.mxu1 %v1903_v30  ;;  %v522_v30 = vld [vmem:[#allocation2 + $0x138] sm:$0xff]  ;;  %v526_v31 = vld [vmem:[#allocation2 + $0x180] sm:$0xff]  ;;  %v1949_v36 = vpack.c.bf16 %v517_v28, %v513_v27  ;;  %v1953_v48 = vpack.c.bf16 %v525_v41, %v521_v40  ;;  %v533_v53 = vld [vmem:[#allocation2 + $0x208] sm:$0xff] }
  0x27   :  { %1776 = vmatprep.mubr.msk.f32.mxu0 %vm68_vm0, %v47_v12  ;;  %1908 = vmatprep.subr.bf16.mxu1 %v1907_v33  ;;  %v1951_v39 = vpack.c.bf16 %v526_v31, %v522_v30  ;;  %v529_v52 = vld [vmem:[#allocation2 + $0x1c0] sm:$0xff]  ;;  %v552_v27 = vld [vmem:[#allocation2 + $0x368] sm:$0xff]  ;;  %v556_v28 = vld [vmem:[#allocation2 + $0x3b0] sm:$0xff] }
  0x28   :  { %1920 = vmatprep.subr.bf16.mxu0 %v1919_v51  ;;  %v542_v55 = vld [vmem:[#allocation2 + $0x2a0] sm:$0xff]  ;;  %v1957_v60 = vpack.c.bf16 %v533_v53, %v529_v52  ;;  %v1935_v30 = vpack.c.bf16 %v556_v28, %v552_v27  ;;  %v559_v41 = vld [vmem:[#allocation2 + $0x3f0] sm:$0xff]  ;;  %v2207_v53 = vmov 0.0  }
  0x29   :  { %1922 = vmatpush1.bf16.msra.mxu0 %v1921_v54  ;;  %v538_v54 = vld [vmem:[#allocation2 + $0x258] sm:$0xff]  ;;  %v551_v31 = vld [vmem:[#allocation2 + $0x360] sm:$0xff]  ;;  %v980_v52 = vld [vmem:[#allocation2 + $0x70] sm:$0xff] }
  0x2a   :  { %1777 = vmatmul.mubr.msk.f32.gmra.mrb[6].mxu0 %vm68_vm0, %v48_v13  ;;  %1910 = vmatpush3.bf16.msra.mxu1 %v1907_v33  ;;  %v564_v40 = vld [vmem:[#allocation2 + $0x440] sm:$0xff] }
  0x2b   :  { %1779 = vmatprep.mubr.msk.f32.mxu0 %vm68_vm0, %v49_v14  ;;  %1944 = vmatprep.subr.bf16.mxu1 %v1943_v42  ;;  %v530_v42 = vld [vmem:[#allocation2 + $0x1c8] sm:$0xff] }
  0x2c   :  { %1924 = vmatprep.subr.bf16.mxu0 %v1923_v57  ;;  %v1955_v51 = vpack.c.bf16 %v534_v43, %v530_v42  ;;  %v563_v43 = vld [vmem:[#allocation2 + $0x438] sm:$0xff] }
  0x2d   :  { %1926 = vmatpush1.bf16.msra.mxu0 %v1925_v62 }
  0x2e   :  { %1780 = vmatmul.mubr.msk.f32.gmra.mrb[8].mxu0 %vm68_vm0, %v50_v15  ;;  %1928 = vmatprep.subr.bf16.mxu0 %v1927_v63  ;;  %v1959_v63 = vpack.c.bf16 %v542_v55, %v538_v54  ;;  %v978_v55 = vld [vmem:[#allocation2 + $0x38] sm:$0xff] }
  0x2f   :  { %1782 = vmatprep.mubr.msk.f32.mxu0 %vm68_vm0, %v51_v16  ;;  %v505_v16 = vld [vmem:[#allocation2 + $0x10] sm:$0xff] }
  0x31   :  { %1930 = vmatpush1.bf16.msra.mxu0 %v1929_v2 }
  0x32   :  { %1783 = vmatmul.mubr.msk.f32.gmra.mrb[10].mxu0 %vm68_vm0, %v52_v17  ;;  %v509_v17 = vld [vmem:[#allocation2 + $0x58] sm:$0xff] }
  0x33   :  { %1785 = vmatprep.mubr.msk.f32.mxu0 %vm68_vm0, %v53_v18  ;;  %v514_v18 = vld [vmem:[#allocation2 + $0xa8] sm:$0xff]  ;;  %v1945_v23 = vpack.c.bf16 %v509_v17, %v505_v16  ;;  %v548_v16 = vld [vmem:[#allocation2 + $0x320] sm:$0xff] }
  0x36   :  { %1786 = vmatmul.mubr.msk.f32.gmra.mrb[12].mxu0 %vm68_vm0, %v54_v19  ;;  %v518_v19 = vld [vmem:[#allocation2 + $0xf0] sm:$0xff] }
  0x37   :  { %1788 = vmatprep.mubr.msk.f32.mxu0 %vm68_vm0, %v55_v20  ;;  %v1947_v26 = vpack.c.bf16 %v518_v19, %v514_v18  ;;  %v543_v18 = vld [vmem:[#allocation2 + $0x2d0] sm:$0xff]  ;;  %v547_v19 = vld [vmem:[#allocation2 + $0x318] sm:$0xff] }
  0x3a   :  { %1789 = vmatmul.mubr.msk.f32.gmra.mrb[14].mxu0 %vm68_vm0, %v56_v21 }
  0x3b   :  { %653 = vmatprep.mubr.f32.mxu0 %v2207_v53 }
  0xf1   :  { %v1769_v4 = vpop.f32.mrb[0].mxu0 }
  0xf2   :  { %v189_v5 = vadd.f32 %v1769_v4, %v2367_v3  ;;  %v183_v6 = vpop.f32.mrb[1].mxu0 }
  0xf3   :  { %v184_v7 = vadd.f32 %v2367_v3, %v183_v6 }
  0xf5   :  { %2092 = vtanh.f32 %v184_v7  ;;  %v1772_v8 = vpop.f32.mrb[2].mxu0 }
  0xf6   :  { %2094 = vtanh.f32 %v189_v5  ;;  %v199_v9 = vadd.f32 %v1772_v8, %v2367_v3  ;;  %v193_v10 = vpop.f32.mrb[3].mxu0 }
  0xf7   :  { %v194_v11 = vadd.f32 %v2367_v3, %v193_v10 }
  0xf8   :  { %2096 = vtanh.f32 %v199_v9 }
  0xf9   :  { %2098 = vtanh.f32 %v194_v11  ;;  %v1775_v12 = vpop.f32.mrb[4].mxu0 }
  0xfa   :  { %v209_v13 = vadd.f32 %v1775_v12, %v2367_v3  ;;  %v203_v14 = vpop.f32.mrb[5].mxu0  ;;  %v537_v12 = vld [vmem:[#allocation2 + $0x250] sm:$0xff] }
  0xfb   :  { %v204_v15 = vadd.f32 %v2367_v3, %v203_v14 }
  0xfc   :  { %2100 = vtanh.f32 %v209_v13  ;;  %v541_v13 = vld [vmem:[#allocation2 + $0x298] sm:$0xff] }
  0xfd   :  { %2102 = vtanh.f32 %v204_v15  ;;  %v1778_v20 = vpop.f32.mrb[6].mxu0  ;;  %v1961_v14 = vpack.c.bf16 %v541_v13, %v537_v12  ;;  %v544_v15 = vld [vmem:[#allocation2 + $0x2d8] sm:$0xff] }
  0xfe   :  { %v219_v21 = vadd.f32 %v1778_v20, %v2367_v3  ;;  %v213_v22 = vpop.f32.mrb[7].mxu0  ;;  %v1931_v17 = vpack.c.bf16 %v548_v16, %v544_v15  ;;  %v546_v20 = vld [vmem:[#allocation2 + $0x2e8] sm:$0xff]  ;;  %v983_v15 = vld [vmem:[#allocation2 + $0xb0] sm:$0xff]  ;;  %v987_v16 = vld [vmem:[#allocation2 + $0xf8] sm:$0xff] }
  0xff   :  { %v2093_v24 = vpop.eup %2092  ;;  %v214_v25 = vadd.f32 %v2367_v3, %v213_v22  ;;  %v550_v22 = vld [vmem:[#allocation2 + $0x330] sm:$0xff]  ;;  %v1981_v27 = vpack.c.bf16 %v987_v16, %v983_v15 }
 0x100   :  { %v2095_v29 = vpop.eup %2094  ;;  %1807 = vmatprep.mubr.msk.f32.mxu1 %vm293_vm1, %v2093_v24  ;;  %2104 = vtanh.f32 %v219_v21  ;;  %v1933_v21 = vpack.c.bf16 %v547_v19, %v543_v18  ;;  %v549_v24 = vld [vmem:[#allocation2 + $0x328] sm:$0xff]  ;;  %1932 = vmatprep.subr.bf16.mxu0 %v1931_v17 }
 0x101   :  { %1808 = vmatmul.mubr.msk.f32.vlgmr.msra.gmra.mrb[0].mxu1 %vm293_vm1, %v2095_v29  ;;  %2106 = vtanh.f32 %v214_v25  ;;  %v1781_v32 = vpop.f32.mrb[8].mxu0  ;;  %v1963_v25 = vpack.c.bf16 %v550_v22, %v546_v20  ;;  %v554_v29 = vld [vmem:[#allocation2 + $0x378] sm:$0xff]  ;;  %v992_v19 = vld [vmem:[#allocation2 + $0x148] sm:$0xff]  ;;  %v996_v22 = vld [vmem:[#allocation2 + $0x190] sm:$0xff] }
 0x102   :  { %v2097_v33 = vpop.eup %2096  ;;  %v229_v34 = vadd.f32 %v1781_v32, %v2367_v3  ;;  %v223_v35 = vpop.f32.mrb[9].mxu0  ;;  %1946 = vmatpush1.bf16.msra.mxu1 %v1945_v23  ;;  %v545_v23 = vld [vmem:[#allocation2 + $0x2e0] sm:$0xff]  ;;  %1934 = vmatpush1.bf16.msra.mxu0 %v1933_v21  ;;  %v555_v32 = vld [vmem:[#allocation2 + $0x3a8] sm:$0xff]  ;;  %v990_v21 = vld [vmem:[#allocation2 + $0x110] sm:$0xff] }
 0x103   :  { %v2099_v37 = vpop.eup %2098  ;;  %v224_v38 = vadd.f32 %v2367_v3, %v223_v35  ;;  %1948 = vmatprep.subr.bf16.mxu1 %v1947_v26  ;;  %v1965_v26 = vpack.c.bf16 %v549_v24, %v545_v23  ;;  %1936 = vmatprep.subr.bf16.mxu0 %v1935_v30  ;;  %v986_v20 = vld [vmem:[#allocation2 + $0xc8] sm:$0xff]  ;;  %v985_v23 = vld [vmem:[#allocation2 + $0xc0] sm:$0xff] }
 0x104   :  { %1810 = vmatprep.mubr.msk.f32.mxu1 %vm293_vm1, %v2099_v37  ;;  %2108 = vtanh.f32 %v229_v34  ;;  %v1937_v34 = vpack.c.bf16 %v555_v32, %v551_v31  ;;  %v557_v37 = vld [vmem:[#allocation2 + $0x3b8] sm:$0xff]  ;;  %v989_v24 = vld [vmem:[#allocation2 + $0x108] sm:$0xff]  ;;  %v991_v30 = vld [vmem:[#allocation2 + $0x140] sm:$0xff] }
 0x105   :  { %1811 = vmatmul.mubr.msk.f32.gmra.mrb[2].mxu1 %vm293_vm1, %v2097_v33  ;;  %2110 = vtanh.f32 %v224_v38  ;;  %v1784_v44 = vpop.f32.mrb[10].mxu0  ;;  %v558_v33 = vld [vmem:[#allocation2 + $0x3c0] sm:$0xff]  ;;  %v995_v31 = vld [vmem:[#allocation2 + $0x188] sm:$0xff] }
 0x106   :  { %v2101_v45 = vpop.eup %2100  ;;  %v239_v46 = vadd.f32 %v1784_v44, %v2367_v3  ;;  %v233_v47 = vpop.f32.mrb[11].mxu0  ;;  %1950 = vmatpush1.bf16.msra.mxu1 %v1949_v36  ;;  %v1967_v35 = vpack.c.bf16 %v558_v33, %v554_v29  ;;  %v553_v36 = vld [vmem:[#allocation2 + $0x370] sm:$0xff]  ;;  %1938 = vmatpush1.bf16.msra.mxu0 %v1937_v34  ;;  %v562_v44 = vld [vmem:[#allocation2 + $0x408] sm:$0xff]  ;;  %v2011_v29 = vpack.c.bf16 %v990_v21, %v986_v20 }
 0x107   :  { %v2103_v49 = vpop.eup %2102  ;;  %v234_v50 = vadd.f32 %v2367_v3, %v233_v47  ;;  %1952 = vmatprep.subr.bf16.mxu1 %v1951_v39  ;;  %v1969_v38 = vpack.c.bf16 %v557_v37, %v553_v36  ;;  %v560_v39 = vld [vmem:[#allocation2 + $0x3f8] sm:$0xff]  ;;  %v1983_v33 = vpack.c.bf16 %v996_v22, %v992_v19  ;;  %v2013_v34 = vpack.c.bf16 %v989_v24, %v985_v23  ;;  %v998_v37 = vld [vmem:[#allocation2 + $0x1a0] sm:$0xff]  ;;  %v1024_v22 = vld [vmem:[#allocation2 + $0x388] sm:$0xff] }
 0x108   :  { %1813 = vmatprep.mubr.msk.f32.mxu1 %vm293_vm1, %v2103_v49  ;;  %2112 = vtanh.f32 %v239_v46  ;;  %v1939_v42 = vpack.c.bf16 %v564_v40, %v560_v39  ;;  %v1941_v46 = vpack.c.bf16 %v563_v43, %v559_v41  ;;  %v565_v49 = vld [vmem:[#allocation2 + $0x448] sm:$0xff]  ;;  %v994_v36 = vld [vmem:[#allocation2 + $0x158] sm:$0xff]  ;;  %v993_v39 = vld [vmem:[#allocation2 + $0x150] sm:$0xff]  ;;  %v1985_v43 = vpack.c.bf16 %v995_v31, %v991_v30 }
 0x109   :  { %1814 = vmatmul.mubr.msk.f32.gmra.mrb[4].mxu1 %vm293_vm1, %v2101_v45  ;;  %2114 = vtanh.f32 %v234_v50  ;;  %v1787_v56 = vpop.f32.mrb[12].mxu0  ;;  %v566_v45 = vld [vmem:[#allocation2 + $0x450] sm:$0xff]  ;;  %v997_v40 = vld [vmem:[#allocation2 + $0x198] sm:$0xff]  ;;  %v1018_v23 = vld [vmem:[#allocation2 + $0x308] sm:$0xff] }
 0x10a   :  { %v2105_v57 = vpop.eup %2104  ;;  %v249_v58 = vadd.f32 %v1787_v56, %v2367_v3  ;;  %v243_v59 = vpop.f32.mrb[13].mxu0  ;;  %1954 = vmatpush1.bf16.msra.mxu1 %v1953_v48  ;;  %v1971_v47 = vpack.c.bf16 %v566_v45, %v562_v44  ;;  %v561_v48 = vld [vmem:[#allocation2 + $0x400] sm:$0xff]  ;;  %1940 = vmatprep.subr.bf16.mxu0 %v1939_v42  ;;  %v2015_v45 = vpack.c.bf16 %v998_v37, %v994_v36  ;;  %v1019_v19 = vld [vmem:[#allocation2 + $0x338] sm:$0xff]  ;;  %v1022_v24 = vld [vmem:[#allocation2 + $0x350] sm:$0xff] }
 0x10b   :  { %v2107_v61 = vpop.eup %2106  ;;  %v244_v62 = vadd.f32 %v2367_v3, %v243_v59  ;;  %1956 = vmatprep.subr.bf16.mxu1 %v1955_v51  ;;  %v1973_v50 = vpack.c.bf16 %v565_v49, %v561_v48  ;;  %1942 = vmatpush1.bf16.msra.mxu0 %v1941_v46  ;;  %v976_v51 = vld [vmem:[#allocation2 + $0x28] sm:$0xff]  ;;  %v982_v56 = vld [vmem:[#allocation2 + $0x80] sm:$0xff]  ;;  %v999_v46 = vld [vmem:[#allocation2 + $0x1d0] sm:$0xff] }
 0x10c   :  { %1816 = vmatprep.mubr.msk.f32.mxu1 %vm293_vm1, %v2107_v61  ;;  %2116 = vtanh.f32 %v249_v58  ;;  %v1975_v54 = vpack.c.bf16 %v980_v52, %v976_v51  ;;  %v2406_v58 = vld [vmem:[%s2828_s4] ss:$0 sm:$0xff]  ;;  %v1008_v51 = vld [vmem:[#allocation2 + $0x268] sm:$0xff] }
 0x10d   :  { %1817 = vmatmul.mubr.msk.f32.gmra.mrb[6].mxu1 %vm293_vm1, %v2105_v57  ;;  %2118 = vtanh.f32 %v244_v62  ;;  %v1790_v0 = vpop.f32.mrb[14].mxu0  ;;  %v2007_v57 = vpack.c.bf16 %v982_v56, %v978_v55  ;;  %v1002_v52 = vld [vmem:[#allocation2 + $0x1e8] sm:$0xff]  ;;  %v1012_v55 = vld [vmem:[#allocation2 + $0x2b0] sm:$0xff]  ;;  %v1001_v56 = vld [vmem:[#allocation2 + $0x1e0] sm:$0xff] }
 0x10e   :  { %v2109_v1 = vpop.eup %2108  ;;  %v259_v2 = vadd.f32 %v1790_v0, %v2367_v3  ;;  %v253_v4 = vpop.f32.mrb[15].mxu0  ;;  %1958 = vmatpush1.bf16.msra.mxu1 %v1957_v60  ;;  %1976 = vmatprep.subr.bf16.mxu0 %v1975_v54  ;;  %v1006_v54 = vld [vmem:[#allocation2 + $0x230] sm:$0xff] }
 0x10f   :  { %v2111_v5 = vpop.eup %2110  ;;  %v254_v6 = vadd.f32 %v2367_v3, %v253_v4  ;;  %1960 = vmatprep.subr.bf16.mxu1 %v1959_v63 }
 0x110   :  { %1819 = vmatprep.mubr.msk.f32.mxu1 %vm293_vm1, %v2111_v5  ;;  %2120 = vtanh.f32 %v259_v2  ;;  %v975_v5 = vld [vmem:[#allocation2 + $0x20] sm:$0xff] }
 0x111   :  { %1820 = vmatmul.mubr.msk.f32.gmra.mrb[8].mxu1 %vm293_vm1, %v2109_v1  ;;  %2122 = vtanh.f32 %v254_v6  ;;  %v979_v6 = vld [vmem:[#allocation2 + $0x68] sm:$0xff] }
 0x112   :  { %v2113_v7 = vpop.eup %2112  ;;  %1962 = vmatpush1.bf16.msra.mxu1 %v1961_v14 }
 0x113   :  { %v2115_v8 = vpop.eup %2114  ;;  %1964 = vmatprep.subr.bf16.mxu1 %v1963_v25 }
 0x114   :  { %1822 = vmatprep.mubr.msk.f32.mxu1 %vm293_vm1, %v2115_v8  ;;  %v988_v8 = vld [vmem:[#allocation2 + $0x100] sm:$0xff] }
 0x115   :  { %1823 = vmatmul.mubr.msk.f32.gmra.mrb[10].mxu1 %vm293_vm1, %v2113_v7  ;;  %v984_v7 = vld [vmem:[#allocation2 + $0xb8] sm:$0xff] }
 0x116   :  { %v2117_v9 = vpop.eup %2116  ;;  %1966 = vmatpush1.bf16.msra.mxu1 %v1965_v26  ;;  %v1979_v14 = vpack.c.bf16 %v988_v8, %v984_v7  ;;  %v1010_v7 = vld [vmem:[#allocation2 + $0x278] sm:$0xff]  ;;  %v1014_v8 = vld [vmem:[#allocation2 + $0x2c0] sm:$0xff] }
 0x117   :  { %v2119_v10 = vpop.eup %2118  ;;  %1968 = vmatprep.subr.bf16.mxu1 %v1967_v35  ;;  %v1000_v35 = vld [vmem:[#allocation2 + $0x1d8] sm:$0xff]  ;;  %v2023_v16 = vpack.c.bf16 %v1014_v8, %v1010_v7 }
 0x118   :  { %1825 = vmatprep.mubr.msk.f32.mxu1 %vm293_vm1, %v2119_v10  ;;  %v981_v10 = vld [vmem:[#allocation2 + $0x78] sm:$0xff] }
 0x119   :  { %1826 = vmatmul.mubr.msk.f32.gmra.mrb[12].mxu1 %vm293_vm1, %v2117_v9  ;;  %v977_v9 = vld [vmem:[#allocation2 + $0x30] sm:$0xff] }
 0x11a   :  { %v2121_v3 = vpop.eup %2120  ;;  %1970 = vmatpush1.bf16.msra.mxu1 %v1969_v38  ;;  %v2009_v18 = vpack.c.bf16 %v981_v10, %v977_v9  ;;  %v1004_v38 = vld [vmem:[#allocation2 + $0x220] sm:$0xff]  ;;  %v1009_v10 = vld [vmem:[#allocation2 + $0x270] sm:$0xff] }
 0x11b   :  { %v2123_v11 = vpop.eup %2122  ;;  %1972 = vmatprep.subr.bf16.mxu1 %v1971_v47  ;;  %v1003_v47 = vld [vmem:[#allocation2 + $0x218] sm:$0xff]  ;;  %v1987_v49 = vpack.c.bf16 %v1004_v38, %v1000_v35  ;;  %v1020_v9 = vld [vmem:[#allocation2 + $0x340] sm:$0xff]  ;;  %v1027_v35 = vld [vmem:[#allocation2 + $0x3c8] sm:$0xff] }
 0x11c   :  { %1828 = vmatprep.mubr.msk.f32.mxu1 %vm293_vm1, %v2123_v11  ;;  %v1977_v11 = vpack.c.bf16 %v979_v6, %v975_v5  ;;  %v1016_v6 = vld [vmem:[#allocation2 + $0x2f8] sm:$0xff] }
 0x11d   :  { %1829 = vmatmul.mubr.msk.f32.gmra.mrb[14].mxu1 %vm293_vm1, %v2121_v3 }
 0x11e   :  { %814 = vmatprep.mubr.f32.mxu1 %v2207_v53  ;;  %1974 = vmatpush1.bf16.msra.mxu1 %v1973_v50  ;;  %v2017_v50 = vpack.c.bf16 %v997_v40, %v993_v39  ;;  %v1032_v39 = vld [vmem:[#allocation2 + $0x418] sm:$0xff] }
 0x11f   :  { %2008 = vmatprep.subr.bf16.mxu1 %v2007_v57  ;;  %v1005_v57 = vld [vmem:[#allocation2 + $0x228] sm:$0xff]  ;;  %v1026_v40 = vld [vmem:[#allocation2 + $0x398] sm:$0xff] }
 0x120   :  { %v2021_v5 = vpack.c.bf16 %v1005_v57, %v1001_v56  ;;  %v1034_v56 = vld [vmem:[#allocation2 + $0x428] sm:$0xff]  ;;  %v1038_v57 = vld [vmem:[#allocation2 + $0x470] sm:$0xff] }
 0x1d4   :  { %v1809_v59 = vpop.f32.mrb[0].mxu1 }
 0x1d5   :  { %v408_v60 = vpop.f32.mrb[1].mxu1  ;;  %v414_v62 = vadd.f32 %v1809_v59, %v2406_v58 }
 0x1d6   :  { %v409_v61 = vadd.f32 %v2406_v58, %v408_v60 }
 0x1d8   :  { %2124 = vtanh.f32 %v409_v61  ;;  %v1812_v63 = vpop.f32.mrb[2].mxu1  ;;  %v1989_v61 = vpack.c.bf16 %v1003_v47, %v999_v46 }
 0x1d9   :  { %v418_v0 = vpop.f32.mrb[3].mxu1  ;;  %2126 = vtanh.f32 %v414_v62  ;;  %v424_v3 = vadd.f32 %v1812_v63, %v2406_v58  ;;  %v2019_v63 = vpack.c.bf16 %v1006_v54, %v1002_v52 }
 0x1da   :  { %v419_v1 = vadd.f32 %v2406_v58, %v418_v0  ;;  %v1007_v0 = vld [vmem:[#allocation2 + $0x260] sm:$0xff] }
 0x1dc   :  { %v1815_v2 = vpop.f32.mrb[4].mxu1  ;;  %2128 = vtanh.f32 %v419_v1  ;;  %v1011_v1 = vld [vmem:[#allocation2 + $0x2a8] sm:$0xff] }
 0x1dd   :  { %v428_v4 = vpop.f32.mrb[5].mxu1  ;;  %2130 = vtanh.f32 %v424_v3  ;;  %v434_v41 = vadd.f32 %v1815_v2, %v2406_v58  ;;  %v1013_v3 = vld [vmem:[#allocation2 + $0x2b8] sm:$0xff] }
 0x1de   :  { %v429_v25 = vadd.f32 %v2406_v58, %v428_v4  ;;  %v1991_v4 = vpack.c.bf16 %v1012_v55, %v1008_v51  ;;  %v2025_v21 = vpack.c.bf16 %v1013_v3, %v1009_v10  ;;  %v1035_v51 = vld [vmem:[#allocation2 + $0x458] sm:$0xff] }
 0x1e0   :  { %v2412_v12 = vpop.f32.mrb[6].mxu1  ;;  %2132 = vtanh.f32 %v429_v25  ;;  %v1028_v25 = vld [vmem:[#allocation2 + $0x3d0] sm:$0xff] }
 0x1e1   :  { %v2414_v13 = vpop.f32.mrb[7].mxu1  ;;  %2134 = vtanh.f32 %v434_v41  ;;  %v1999_v37 = vpack.c.bf16 %v1028_v25, %v1024_v22  ;;  %v1030_v41 = vld [vmem:[#allocation2 + $0x3e0] sm:$0xff] }
 0x1e2   :  { %v2416_v17 = vpop.eup %2124  ;;  %v439_v59 = vadd.f32 %v2406_v58, %v2414_v13 }
 0x1e3   :  { %654 = vmatmul.mubr.f32.vlgmr.msra.gmra.mrb[16].mxu0 %v2416_v17  ;;  %815 = vmatmul.mubr.f32.vlgmr.msra.gmra.mrb[16].mxu1 %v2416_v17  ;;  %v2427_v32 = vpop.eup %2126 }
 0x1e4   :  { %1978 = vmatpush1.bf16.msra.mxu0 %v1977_v11  ;;  %659 = vmatprep.mubr.f32.mxu0 %v2207_v53  ;;  %v2422_v26 = vpop.f32.mrb[8].mxu1  ;;  %v444_v11 = vadd.f32 %v2412_v12, %v2406_v58  ;;  %2136 = vtanh.f32 %v439_v59  ;;  %v1995_v12 = vpack.c.bf16 %v1020_v9, %v1016_v6  ;;  %v1037_v59 = vld [vmem:[#allocation2 + $0x468] sm:$0xff] }
 0x1e5   :  { %820 = vmatprep.mubr.f32.mxu1 %v2207_v53  ;;  %1980 = vmatprep.subr.bf16.mxu0 %v1979_v14  ;;  %v2425_v28 = vpop.f32.mrb[9].mxu1  ;;  %v1993_v14 = vpack.c.bf16 %v1011_v1, %v1007_v0  ;;  %v454_v46 = vadd.f32 %v2422_v26, %v2406_v58  ;;  %v1033_v26 = vld [vmem:[#allocation2 + $0x420] sm:$0xff] }
 0x1e6   :  { %2010 = vmatpush1.bf16.msra.mxu1 %v2009_v18  ;;  %v2438_v48 = vpop.eup %2128  ;;  %v1015_v18 = vld [vmem:[#allocation2 + $0x2f0] sm:$0xff]  ;;  %2138 = vtanh.f32 %v444_v11  ;;  %v449_v30 = vadd.f32 %v2406_v58, %v2425_v28  ;;  %v1036_v28 = vld [vmem:[#allocation2 + $0x460] sm:$0xff]  ;;  %v2037_v6 = vpack.c.bf16 %v1037_v59, %v1033_v26 }
 0x1e7   :  { %660 = vmatmul.mubr.f32.gmra.mrb[18].mxu0 %v2427_v32  ;;  %821 = vmatmul.mubr.f32.gmra.mrb[18].mxu1 %v2427_v32  ;;  %v2450_v2 = vpop.eup %2130  ;;  %v1997_v31 = vpack.c.bf16 %v1019_v19, %v1015_v18  ;;  %v2003_v54 = vpack.c.bf16 %v1036_v28, %v1032_v39  ;;  %v1450_v18 = vld [vmem:[#allocation2 + $0x118] sm:$0xff]  ;;  %v1461_v39 = vld [vmem:[#allocation2 + $0x430] sm:$0xff] }
 0x1e8   :  { %665 = vmatprep.mubr.f32.mxu0 %v2207_v53  ;;  %826 = vmatprep.mubr.f32.mxu1 %v2207_v53  ;;  %v2434_v42 = vpop.f32.mrb[10].mxu1  ;;  %2140 = vtanh.f32 %v449_v30 }
 0x1e9   :  { %1982 = vmatpush1.bf16.msra.mxu0 %v1981_v27  ;;  %2012 = vmatprep.subr.bf16.mxu1 %v2011_v29  ;;  %v2436_v44 = vpop.f32.mrb[11].mxu1  ;;  %v1017_v27 = vld [vmem:[#allocation2 + $0x300] sm:$0xff]  ;;  %v1021_v29 = vld [vmem:[#allocation2 + $0x348] sm:$0xff]  ;;  %2142 = vtanh.f32 %v454_v46 }
 0x1ea   :  { %1984 = vmatprep.subr.bf16.mxu0 %v1983_v33  ;;  %2014 = vmatpush1.bf16.msra.mxu1 %v2013_v34  ;;  %v2462_v20 = vpop.eup %2132  ;;  %v2027_v33 = vpack.c.bf16 %v1022_v24, %v1018_v23  ;;  %v1023_v34 = vld [vmem:[#allocation2 + $0x380] sm:$0xff]  ;;  %v2029_v38 = vpack.c.bf16 %v1021_v29, %v1017_v27  ;;  %v459_v0 = vadd.f32 %v2406_v58, %v2436_v44  ;;  %v1453_v23 = vld [vmem:[#allocation2 + $0x1f0] sm:$0xff]  ;;  %v1454_v24 = vld [vmem:[#allocation2 + $0x238] sm:$0xff] }
 0x1eb   :  { %666 = vmatmul.mubr.f32.gmra.mrb[20].mxu0 %v2438_v48  ;;  %827 = vmatmul.mubr.f32.gmra.mrb[20].mxu1 %v2438_v48  ;;  %v2470_v36 = vpop.eup %2134  ;;  %v2001_v47 = vpack.c.bf16 %v1027_v35, %v1023_v34  ;;  %v464_v44 = vadd.f32 %v2434_v42, %v2406_v58  ;;  %v2051_v25 = vpack.c.bf16 %v1454_v24, %v1453_v23  ;;  %v1455_v27 = vld [vmem:[#allocation2 + $0x280] sm:$0xff]  ;;  %v1456_v29 = vld [vmem:[#allocation2 + $0x2c8] sm:$0xff] }
 0x1ec   :  { %671 = vmatprep.mubr.f32.mxu0 %v2207_v53  ;;  %832 = vmatprep.mubr.f32.mxu1 %v2207_v53  ;;  %v2446_v60 = vpop.f32.mrb[12].mxu1  ;;  %2144 = vtanh.f32 %v459_v0  ;;  %v2055_v30 = vpack.c.bf16 %v1456_v29, %v1455_v27  ;;  %v1459_v35 = vld [vmem:[#allocation2 + $0x3a0] sm:$0xff] }
 0x1ed   :  { %1986 = vmatpush1.bf16.msra.mxu0 %v1985_v43  ;;  %2016 = vmatprep.subr.bf16.mxu1 %v2015_v45  ;;  %v2448_v62 = vpop.f32.mrb[13].mxu1  ;;  %v1025_v43 = vld [vmem:[#allocation2 + $0x390] sm:$0xff]  ;;  %v1029_v45 = vld [vmem:[#allocation2 + $0x3d8] sm:$0xff]  ;;  %2146 = vtanh.f32 %v464_v44  ;;  %v474_v10 = vadd.f32 %v2446_v60, %v2406_v58 }
 0x1ee   :  { %1988 = vmatprep.subr.bf16.mxu0 %v1987_v49  ;;  %2018 = vmatpush1.bf16.msra.mxu1 %v2017_v50  ;;  %v2031_v49 = vpack.c.bf16 %v1030_v41, %v1026_v40  ;;  %v1031_v50 = vld [vmem:[#allocation2 + $0x410] sm:$0xff]  ;;  %v2478_v52 = vpop.eup %2136  ;;  %v2033_v55 = vpack.c.bf16 %v1029_v45, %v1025_v43  ;;  %v469_v42 = vadd.f32 %v2406_v58, %v2448_v62  ;;  %v1462_v40 = vld [vmem:[#allocation2 + $0x478] sm:$0xff] }
 0x1ef   :  { %672 = vmatmul.mubr.f32.gmra.mrb[22].mxu0 %v2450_v2  ;;  %833 = vmatmul.mubr.f32.gmra.mrb[22].mxu1 %v2450_v2  ;;  %v2005_v1 = vpack.c.bf16 %v1035_v51, %v1031_v50  ;;  %v2067_v41 = vpack.c.bf16 %v1462_v40, %v1461_v39 }
 0x1f0   :  { %677 = vmatprep.mubr.f32.mxu0 %v2207_v53  ;;  %838 = vmatprep.mubr.f32.mxu1 %v2207_v53  ;;  %v2458_v13 = vpop.f32.mrb[14].mxu1  ;;  %2148 = vtanh.f32 %v469_v42 }
 0x1f1   :  { %1990 = vmatpush1.bf16.msra.mxu0 %v1989_v61  ;;  %2020 = vmatprep.subr.bf16.mxu1 %v2019_v63  ;;  %v2460_v15 = vpop.f32.mrb[15].mxu1  ;;  %v1447_v61 = vld [vmem:[#allocation2 + $0x40] sm:$0xff]  ;;  %v1448_v63 = vld [vmem:[#allocation2 + $0x88] sm:$0xff]  ;;  %2150 = vtanh.f32 %v474_v10  ;;  %v484_v11 = vadd.f32 %v2458_v13, %v2406_v58 }
 0x1f2   :  { %1992 = vmatprep.subr.bf16.mxu0 %v1991_v4  ;;  %2022 = vmatpush1.bf16.msra.mxu1 %v2021_v5  ;;  %v2035_v4 = vpack.c.bf16 %v1038_v57, %v1034_v56  ;;  %v2486_v5 = vpop.eup %2138  ;;  %v2488_v7 = vpack.c.bf16 %v1448_v63, %v1447_v61  ;;  %v479_v3 = vadd.f32 %v2406_v58, %v2460_v15 }
 0x1f3   :  { %678 = vmatmul.mubr.f32.gmra.mrb[24].mxu0 %v2462_v20  ;;  %839 = vmatmul.mubr.f32.gmra.mrb[24].mxu1 %v2462_v20  ;;  %v2496_v8 = vpop.eup %2140 }
 0x1f4   :  { %683 = vmatprep.mubr.f32.mxu0 %v2207_v53  ;;  %844 = vmatprep.mubr.f32.mxu1 %v2207_v53  ;;  %v2506_v9 = vpop.eup %2142  ;;  %2152 = vtanh.f32 %v479_v3 }
 0x1f5   :  { %1994 = vmatpush1.bf16.msra.mxu0 %v1993_v14  ;;  %2024 = vmatprep.subr.bf16.mxu1 %v2023_v16  ;;  %2154 = vtanh.f32 %v484_v11  ;;  %v1449_v16 = vld [vmem:[#allocation2 + $0xd0] sm:$0xff] }
 0x1f6   :  { %1996 = vmatprep.subr.bf16.mxu0 %v1995_v12  ;;  %2026 = vmatpush1.bf16.msra.mxu1 %v2025_v21  ;;  %v2514_v62 = vpop.eup %2144  ;;  %v2043_v19 = vpack.c.bf16 %v1450_v18, %v1449_v16  ;;  %v1451_v12 = vld [vmem:[#allocation2 + $0x160] sm:$0xff]  ;;  %v1452_v21 = vld [vmem:[#allocation2 + $0x1a8] sm:$0xff] }
 0x1f7   :  { %684 = vmatmul.mubr.f32.gmra.mrb[26].mxu0 %v2470_v36  ;;  %845 = vmatmul.mubr.f32.gmra.mrb[26].mxu1 %v2470_v36  ;;  %v2522_v60 = vpop.eup %2146  ;;  %v2047_v22 = vpack.c.bf16 %v1452_v21, %v1451_v12 }
 0x1f8   :  { %689 = vmatprep.mubr.f32.mxu0 %v2207_v53  ;;  %850 = vmatprep.mubr.f32.mxu1 %v2207_v53 }
 0x1f9   :  { %1998 = vmatpush1.bf16.msra.mxu0 %v1997_v31  ;;  %2028 = vmatprep.subr.bf16.mxu1 %v2027_v33  ;;  %v1457_v31 = vld [vmem:[#allocation2 + $0x310] sm:$0xff]  ;;  %v1458_v33 = vld [vmem:[#allocation2 + $0x358] sm:$0xff] }
 0x1fa   :  { %2000 = vmatprep.subr.bf16.mxu0 %v1999_v37  ;;  %2030 = vmatpush1.bf16.msra.mxu1 %v2029_v38  ;;  %v2530_v14 = vpop.eup %2148  ;;  %v2059_v34 = vpack.c.bf16 %v1458_v33, %v1457_v31  ;;  %v1460_v37 = vld [vmem:[#allocation2 + $0x3e8] sm:$0xff] }
 0x1fb   :  { %690 = vmatmul.mubr.f32.gmra.mrb[28].mxu0 %v2478_v52  ;;  %851 = vmatmul.mubr.f32.gmra.mrb[28].mxu1 %v2478_v52  ;;  %v2536_v15 = vpop.eup %2150  ;;  %v2063_v38 = vpack.c.bf16 %v1460_v37, %v1459_v35 }
 0x1fc   :  { %695 = vmatprep.mubr.f32.mxu0 %v2207_v53  ;;  %856 = vmatprep.mubr.f32.mxu1 %v2207_v53 }
 0x1fd   :  { %2002 = vmatpush1.bf16.msra.mxu0 %v2001_v47  ;;  %2032 = vmatprep.subr.bf16.mxu1 %v2031_v49 }
 0x1fe   :  { %2004 = vmatprep.subr.bf16.mxu0 %v2003_v54  ;;  %2034 = vmatpush1.bf16.msra.mxu1 %v2033_v55  ;;  %v2542_v58 = vpop.eup %2152 }
 0x1ff   :  { %696 = vmatmul.mubr.f32.gmra.mrb[30].mxu0 %v2486_v5  ;;  %857 = vmatmul.mubr.f32.gmra.mrb[30].mxu1 %v2486_v5  ;;  %v2548_v13 = vpop.eup %2154 }
 0x200   :  { %701 = vmatprep.mubr.f32.mxu0 %v2207_v53  ;;  %862 = vmatprep.mubr.f32.mxu1 %v2207_v53 }
 0x201   :  { %2006 = vmatpush1.bf16.msra.mxu0 %v2005_v1  ;;  %2036 = vmatprep.subr.bf16.mxu1 %v2035_v4 }
 0x202   :  { %2038 = vmatpush1.bf16.msra.mxu1 %v2037_v6  ;;  %2040 = vmatprep.subr.bf16.mxu0 %v2488_v7 }
 0x203   :  { %702 = vmatmul.mubr.f32.gmra.mrb[32].mxu0 %v2496_v8  ;;  %863 = vmatmul.mubr.f32.gmra.mrb[32].mxu1 %v2496_v8 }
 0x204   :  { %707 = vmatprep.mubr.f32.mxu0 %v2207_v53  ;;  %868 = vmatprep.mubr.f32.mxu1 %v2207_v53 }
 0x205   :  { %2071 = vmatprep.subr.bf16.mxu1 %v2488_v7 }
 0x207   :  { %708 = vmatmul.mubr.f32.gmra.mrb[34].mxu0 %v2506_v9  ;;  %869 = vmatmul.mubr.f32.gmra.mrb[34].mxu1 %v2506_v9 }
 0x208   :  { %713 = vmatprep.mubr.f32.mxu0 %v2207_v53  ;;  %874 = vmatprep.mubr.f32.mxu1 %v2207_v53 }
 0x20b   :  { %714 = vmatmul.mubr.f32.gmra.mrb[36].mxu0 %v2514_v62  ;;  %875 = vmatmul.mubr.f32.gmra.mrb[36].mxu1 %v2514_v62 }
 0x20c   :  { %719 = vmatprep.mubr.f32.mxu0 %v2207_v53  ;;  %880 = vmatprep.mubr.f32.mxu1 %v2207_v53 }
 0x20f   :  { %720 = vmatmul.mubr.f32.gmra.mrb[38].mxu0 %v2522_v60  ;;  %881 = vmatmul.mubr.f32.gmra.mrb[38].mxu1 %v2522_v60 }
 0x210   :  { %725 = vmatprep.mubr.f32.mxu0 %v2207_v53  ;;  %886 = vmatprep.mubr.f32.mxu1 %v2207_v53 }
 0x213   :  { %726 = vmatmul.mubr.f32.gmra.mrb[40].mxu0 %v2530_v14  ;;  %887 = vmatmul.mubr.f32.gmra.mrb[40].mxu1 %v2530_v14 }
 0x214   :  { %731 = vmatprep.mubr.f32.mxu0 %v2207_v53  ;;  %892 = vmatprep.mubr.f32.mxu1 %v2207_v53 }
 0x217   :  { %732 = vmatmul.mubr.f32.gmra.mrb[42].mxu0 %v2536_v15  ;;  %893 = vmatmul.mubr.f32.gmra.mrb[42].mxu1 %v2536_v15 }
 0x218   :  { %737 = vmatprep.mubr.f32.mxu0 %v2207_v53  ;;  %898 = vmatprep.mubr.f32.mxu1 %v2207_v53 }
 0x21b   :  { %738 = vmatmul.mubr.f32.gmra.mrb[44].mxu0 %v2542_v58  ;;  %899 = vmatmul.mubr.f32.gmra.mrb[44].mxu1 %v2542_v58 }
 0x21c   :  { %743 = vmatprep.mubr.f32.mxu0 %v2207_v53  ;;  %904 = vmatprep.mubr.f32.mxu1 %v2207_v53 }
 0x21f   :  { %744 = vmatmul.mubr.f32.gmra.mrb[46].mxu0 %v2548_v13  ;;  %905 = vmatmul.mubr.f32.gmra.mrb[46].mxu1 %v2548_v13 }
 0x220   :  { %1125 = vmatprep.mubr.f32.mxu0 %v2207_v53  ;;  %1286 = vmatprep.mubr.f32.mxu1 %v2207_v53 }
 0x223   :  { %1126 = vmatmul.mubr.f32.vlgmr.msra.gmra.mrb[48].mxu0 %v2416_v17  ;;  %1287 = vmatmul.mubr.f32.vlgmr.msra.gmra.mrb[48].mxu1 %v2416_v17 }
 0x224   :  { %2042 = vmatpush3.bf16.msra.mxu0 %v2488_v7  ;;  %1131 = vmatprep.mubr.f32.mxu0 %v2207_v53 }
 0x225   :  { %1292 = vmatprep.mubr.f32.mxu1 %v2207_v53  ;;  %2044 = vmatprep.subr.bf16.mxu0 %v2043_v19 }
 0x226   :  { %2079 = vmatpush3.bf16.msra.mxu1 %v2488_v7 }
 0x227   :  { %1132 = vmatmul.mubr.f32.gmra.mrb[50].mxu0 %v2427_v32  ;;  %1293 = vmatmul.mubr.f32.gmra.mrb[50].mxu1 %v2427_v32 }
 0x228   :  { %1137 = vmatprep.mubr.f32.mxu0 %v2207_v53  ;;  %1298 = vmatprep.mubr.f32.mxu1 %v2207_v53 }
 0x229   :  { %2046 = vmatpush3.bf16.msra.mxu0 %v2043_v19  ;;  %2072 = vmatprep.subr.bf16.mxu1 %v2043_v19 }
 0x22a   :  { %2048 = vmatprep.subr.bf16.mxu0 %v2047_v22  ;;  %2080 = vmatpush3.bf16.msra.mxu1 %v2043_v19 }
 0x22b   :  { %1138 = vmatmul.mubr.f32.gmra.mrb[52].mxu0 %v2438_v48  ;;  %1299 = vmatmul.mubr.f32.gmra.mrb[52].mxu1 %v2438_v48 }
 0x22c   :  { %1143 = vmatprep.mubr.f32.mxu0 %v2207_v53  ;;  %1304 = vmatprep.mubr.f32.mxu1 %v2207_v53 }
 0x22d   :  { %2050 = vmatpush3.bf16.msra.mxu0 %v2047_v22  ;;  %2073 = vmatprep.subr.bf16.mxu1 %v2047_v22 }
 0x22e   :  { %2052 = vmatprep.subr.bf16.mxu0 %v2051_v25  ;;  %2081 = vmatpush3.bf16.msra.mxu1 %v2047_v22 }
 0x22f   :  { %1144 = vmatmul.mubr.f32.gmra.mrb[54].mxu0 %v2450_v2  ;;  %1305 = vmatmul.mubr.f32.gmra.mrb[54].mxu1 %v2450_v2 }
 0x230   :  { %1149 = vmatprep.mubr.f32.mxu0 %v2207_v53  ;;  %1310 = vmatprep.mubr.f32.mxu1 %v2207_v53 }
 0x231   :  { %2054 = vmatpush3.bf16.msra.mxu0 %v2051_v25  ;;  %2074 = vmatprep.subr.bf16.mxu1 %v2051_v25 }
 0x232   :  { %2056 = vmatprep.subr.bf16.mxu0 %v2055_v30  ;;  %2082 = vmatpush3.bf16.msra.mxu1 %v2051_v25 }
 0x233   :  { %1150 = vmatmul.mubr.f32.gmra.mrb[56].mxu0 %v2462_v20  ;;  %1311 = vmatmul.mubr.f32.gmra.mrb[56].mxu1 %v2462_v20 }
 0x234   :  { %1155 = vmatprep.mubr.f32.mxu0 %v2207_v53  ;;  %1316 = vmatprep.mubr.f32.mxu1 %v2207_v53 }
 0x235   :  { %2058 = vmatpush3.bf16.msra.mxu0 %v2055_v30  ;;  %2075 = vmatprep.subr.bf16.mxu1 %v2055_v30 }
 0x236   :  { %2060 = vmatprep.subr.bf16.mxu0 %v2059_v34  ;;  %2083 = vmatpush3.bf16.msra.mxu1 %v2055_v30 }
 0x237   :  { %1156 = vmatmul.mubr.f32.gmra.mrb[58].mxu0 %v2470_v36  ;;  %1317 = vmatmul.mubr.f32.gmra.mrb[58].mxu1 %v2470_v36 }
 0x238   :  { %1161 = vmatprep.mubr.f32.mxu0 %v2207_v53  ;;  %1322 = vmatprep.mubr.f32.mxu1 %v2207_v53 }
 0x239   :  { %2062 = vmatpush3.bf16.msra.mxu0 %v2059_v34  ;;  %2076 = vmatprep.subr.bf16.mxu1 %v2059_v34 }
 0x23a   :  { %2064 = vmatprep.subr.bf16.mxu0 %v2063_v38  ;;  %2084 = vmatpush3.bf16.msra.mxu1 %v2059_v34 }
 0x23b   :  { %1162 = vmatmul.mubr.f32.gmra.mrb[60].mxu0 %v2478_v52  ;;  %1323 = vmatmul.mubr.f32.gmra.mrb[60].mxu1 %v2478_v52 }
 0x23c   :  { %1167 = vmatprep.mubr.f32.mxu0 %v2207_v53  ;;  %1328 = vmatprep.mubr.f32.mxu1 %v2207_v53 }
 0x23d   :  { %2066 = vmatpush3.bf16.msra.mxu0 %v2063_v38  ;;  %2077 = vmatprep.subr.bf16.mxu1 %v2063_v38 }
 0x23e   :  { %2068 = vmatprep.subr.bf16.mxu0 %v2067_v41  ;;  %2085 = vmatpush3.bf16.msra.mxu1 %v2063_v38 }
 0x23f   :  { %1168 = vmatmul.mubr.f32.gmra.mrb[62].mxu0 %v2486_v5  ;;  %1329 = vmatmul.mubr.f32.gmra.mrb[62].mxu1 %v2486_v5 }
 0x240   :  { %1173 = vmatprep.mubr.f32.mxu0 %v2207_v53  ;;  %1334 = vmatprep.mubr.f32.mxu1 %v2207_v53 }
 0x241   :  { %2070 = vmatpush3.bf16.msra.mxu0 %v2067_v41  ;;  %2078 = vmatprep.subr.bf16.mxu1 %v2067_v41 }
 0x242   :  { %2086 = vmatpush3.bf16.msra.mxu1 %v2067_v41 }
 0x243   :  { %1174 = vmatmul.mubr.f32.gmra.mrb[64].mxu0 %v2496_v8  ;;  %1335 = vmatmul.mubr.f32.gmra.mrb[64].mxu1 %v2496_v8 }
 0x244   :  { %1179 = vmatprep.mubr.f32.mxu0 %v2207_v53  ;;  %1340 = vmatprep.mubr.f32.mxu1 %v2207_v53 }
 0x247   :  { %1180 = vmatmul.mubr.f32.gmra.mrb[66].mxu0 %v2506_v9  ;;  %1341 = vmatmul.mubr.f32.gmra.mrb[66].mxu1 %v2506_v9 }
 0x248   :  { %1185 = vmatprep.mubr.f32.mxu0 %v2207_v53  ;;  %1346 = vmatprep.mubr.f32.mxu1 %v2207_v53 }
 0x24b   :  { %1186 = vmatmul.mubr.f32.gmra.mrb[68].mxu0 %v2514_v62  ;;  %1347 = vmatmul.mubr.f32.gmra.mrb[68].mxu1 %v2514_v62 }
 0x24c   :  { %1191 = vmatprep.mubr.f32.mxu0 %v2207_v53  ;;  %1352 = vmatprep.mubr.f32.mxu1 %v2207_v53 }
 0x24f   :  { %1192 = vmatmul.mubr.f32.gmra.mrb[70].mxu0 %v2522_v60  ;;  %1353 = vmatmul.mubr.f32.gmra.mrb[70].mxu1 %v2522_v60 }
 0x250   :  { %1197 = vmatprep.mubr.f32.mxu0 %v2207_v53  ;;  %1358 = vmatprep.mubr.f32.mxu1 %v2207_v53 }
 0x253   :  { %1198 = vmatmul.mubr.f32.gmra.mrb[72].mxu0 %v2530_v14  ;;  %1359 = vmatmul.mubr.f32.gmra.mrb[72].mxu1 %v2530_v14 }
 0x254   :  { %1203 = vmatprep.mubr.f32.mxu0 %v2207_v53  ;;  %1364 = vmatprep.mubr.f32.mxu1 %v2207_v53 }
 0x257   :  { %1204 = vmatmul.mubr.f32.gmra.mrb[74].mxu0 %v2536_v15  ;;  %1365 = vmatmul.mubr.f32.gmra.mrb[74].mxu1 %v2536_v15 }
 0x258   :  { %1209 = vmatprep.mubr.f32.mxu0 %v2207_v53  ;;  %1370 = vmatprep.mubr.f32.mxu1 %v2207_v53 }
 0x25b   :  { %1210 = vmatmul.mubr.f32.gmra.mrb[76].mxu0 %v2542_v58  ;;  %1371 = vmatmul.mubr.f32.gmra.mrb[76].mxu1 %v2542_v58 }
 0x25c   :  { %1215 = vmatprep.mubr.f32.mxu0 %v2207_v53  ;;  %1376 = vmatprep.mubr.f32.mxu1 %v2207_v53  ;;  %v569_v53 = vlaneseq }
 0x25f   :  { %1216 = vmatmul.mubr.f32.gmra.mrb[78].mxu0 %v2548_v13  ;;  %1377 = vmatmul.mubr.f32.gmra.mrb[78].mxu1 %v2548_v13 }
 0x260   :  { %1863 = vmatprep.mubr.f32.mxu0 %v2416_v17  ;;  %1878 = vmatprep.mubr.f32.mxu1 %v2514_v62  ;;  %v2634_v17 = vshrl.u32 %v569_v53, 7 }
 0x263   :  { %1864 = vmatmul.mubr.f32.vlgmr.msra.gmra.mrb[80].mxu0 %v2427_v32  ;;  %1879 = vmatmul.mubr.f32.vlgmr.msra.gmra.mrb[80].mxu1 %v2522_v60  ;;  %v571_v32 = vsub.s32 0, %v2634_v17 }
 0x264   :  { %1866 = vmatprep.mubr.f32.mxu0 %v2438_v48  ;;  %1881 = vmatprep.mubr.f32.mxu1 %v2530_v14  ;;  %v579_v48 = vsub.s32 2, %v2634_v17 }
 0x267   :  { %1867 = vmatmul.mubr.f32.gmra.mrb[82].mxu0 %v2450_v2  ;;  %1882 = vmatmul.mubr.f32.gmra.mrb[82].mxu1 %v2536_v15  ;;  %v567_v2 = vld [vmem:[%s2830_s6] sm:$0xf] }
 0x268   :  { %1869 = vmatprep.mubr.f32.mxu0 %v2462_v20  ;;  %1884 = vmatprep.mubr.f32.mxu1 %v2542_v58  ;;  %v575_v20 = vsub.s32 1, %v2634_v17  ;;  %v2645_v28 = vrot.slane %v567_v2, %v571_v32  ;;  %v2649_v43 = vrot.slane %v567_v2, %v579_v48 }
 0x26a   :  { %v2653_v45 = vrot.slane %v567_v2, %v575_v20 }
 0x26b   :  { %1870 = vmatmul.mubr.f32.gmra.mrb[84].mxu0 %v2470_v36  ;;  %1885 = vmatmul.mubr.f32.gmra.mrb[84].mxu1 %v2548_v13  ;;  %v583_v36 = vsub.s32 3, %v2634_v17 }
 0x26c   :  { %1872 = vmatprep.mubr.f32.mxu0 %v2478_v52 }
 0x26d   :  { %v2657_v46 = vrot.slane %v567_v2, %v583_v36 }
 0x26f   :  { %1873 = vmatmul.mubr.f32.gmra.mrb[86].mxu0 %v2486_v5 }
 0x270   :  { %1875 = vmatprep.mubr.f32.mxu0 %v2496_v8 }
 0x273   :  { %1876 = vmatmul.mubr.f32.gmra.mrb[88].mxu0 %v2506_v9 }
 0x2b6   :  { %v655_v47 = vpop.f32.mrb[16].mxu0  ;;  %v816_v49 = vpop.f32.mrb[16].mxu1 }
 0x2b7   :  { %v656_v50 = vadd.f32 %v655_v47, %v2645_v28  ;;  %v817_v51 = vadd.f32 %v816_v49, %v2649_v43  ;;  %v657_v52 = vpop.f32.mrb[17].mxu0  ;;  %v818_v54 = vpop.f32.mrb[17].mxu1 }
 0x2b8   :  { %v658_v55 = vadd.f32 %v657_v52, %v2653_v45  ;;  %v819_v56 = vadd.f32 %v818_v54, %v2657_v46 }
 0x2b9   :  { %911 = vst [vmem:[#allocation5] sm:$0xff] %v656_v50  ;;  %913 = vst [vmem:[#allocation5 + $0x10] sm:$0xff] %v817_v51 }
 0x2ba   :  { %912 = vst [vmem:[#allocation5 + $0x8] sm:$0xff] %v658_v55  ;;  %914 = vst [vmem:[#allocation5 + $0x18] sm:$0xff] %v819_v56  ;;  %v661_v57 = vpop.f32.mrb[18].mxu0  ;;  %v822_v26 = vpop.f32.mrb[18].mxu1 }
 0x2bb   :  { %v662_v59 = vadd.f32 %v661_v57, %v2645_v28  ;;  %v823_v61 = vadd.f32 %v822_v26, %v2649_v43  ;;  %v663_v63 = vpop.f32.mrb[19].mxu0  ;;  %v824_v0 = vpop.f32.mrb[19].mxu1 }
 0x2bc   :  { %v664_v1 = vadd.f32 %v663_v63, %v2653_v45  ;;  %v825_v4 = vadd.f32 %v824_v0, %v2657_v46 }
 0x2bd   :  { %915 = vst [vmem:[#allocation5 + $0x48] sm:$0xff] %v662_v59  ;;  %917 = vst [vmem:[#allocation5 + $0x58] sm:$0xff] %v823_v61 }
 0x2be   :  { %916 = vst [vmem:[#allocation5 + $0x50] sm:$0xff] %v664_v1  ;;  %918 = vst [vmem:[#allocation5 + $0x60] sm:$0xff] %v825_v4  ;;  %v667_v5 = vpop.f32.mrb[20].mxu0  ;;  %v828_v6 = vpop.f32.mrb[20].mxu1 }
 0x2bf   :  { %v668_v7 = vadd.f32 %v667_v5, %v2645_v28  ;;  %v829_v44 = vadd.f32 %v828_v6, %v2649_v43  ;;  %v669_v8 = vpop.f32.mrb[21].mxu0  ;;  %v830_v42 = vpop.f32.mrb[21].mxu1 }
 0x2c0   :  { %v670_v9 = vadd.f32 %v669_v8, %v2653_v45  ;;  %v831_v10 = vadd.f32 %v830_v42, %v2657_v46 }
 0x2c1   :  { %919 = vst [vmem:[#allocation5 + $0x90] sm:$0xff] %v668_v7  ;;  %921 = vst [vmem:[#allocation5 + $0xa0] sm:$0xff] %v829_v44 }
 0x2c2   :  { %920 = vst [vmem:[#allocation5 + $0x98] sm:$0xff] %v670_v9  ;;  %922 = vst [vmem:[#allocation5 + $0xa8] sm:$0xff] %v831_v10  ;;  %v673_v62 = vpop.f32.mrb[22].mxu0  ;;  %v834_v3 = vpop.f32.mrb[22].mxu1 }
 0x2c3   :  { %v674_v60 = vadd.f32 %v673_v62, %v2645_v28  ;;  %v835_v11 = vadd.f32 %v834_v3, %v2649_v43  ;;  %v675_v14 = vpop.f32.mrb[23].mxu0  ;;  %v836_v15 = vpop.f32.mrb[23].mxu1 }
 0x2c4   :  { %v676_v58 = vadd.f32 %v675_v14, %v2653_v45  ;;  %v837_v13 = vadd.f32 %v836_v15, %v2657_v46 }
 0x2c5   :  { %923 = vst [vmem:[#allocation5 + $0xd8] sm:$0xff] %v674_v60  ;;  %925 = vst [vmem:[#allocation5 + $0xe8] sm:$0xff] %v835_v11 }
 0x2c6   :  { %924 = vst [vmem:[#allocation5 + $0xe0] sm:$0xff] %v676_v58  ;;  %926 = vst [vmem:[#allocation5 + $0xf0] sm:$0xff] %v837_v13  ;;  %v679_v16 = vpop.f32.mrb[24].mxu0  ;;  %v840_v18 = vpop.f32.mrb[24].mxu1 }
 0x2c7   :  { %v680_v19 = vadd.f32 %v679_v16, %v2645_v28  ;;  %v841_v12 = vadd.f32 %v840_v18, %v2649_v43  ;;  %v681_v21 = vpop.f32.mrb[25].mxu0  ;;  %v842_v22 = vpop.f32.mrb[25].mxu1 }
 0x2c8   :  { %v682_v23 = vadd.f32 %v681_v21, %v2653_v45  ;;  %v843_v24 = vadd.f32 %v842_v22, %v2657_v46 }
 0x2c9   :  { %927 = vst [vmem:[#allocation5 + $0x120] sm:$0xff] %v680_v19  ;;  %929 = vst [vmem:[#allocation5 + $0x130] sm:$0xff] %v841_v12 }
 0x2ca   :  { %928 = vst [vmem:[#allocation5 + $0x128] sm:$0xff] %v682_v23  ;;  %930 = vst [vmem:[#allocation5 + $0x138] sm:$0xff] %v843_v24  ;;  %v685_v25 = vpop.f32.mrb[26].mxu0  ;;  %v846_v27 = vpop.f32.mrb[26].mxu1 }
 0x2cb   :  { %v686_v29 = vadd.f32 %v685_v25, %v2645_v28  ;;  %v847_v30 = vadd.f32 %v846_v27, %v2649_v43  ;;  %v687_v31 = vpop.f32.mrb[27].mxu0  ;;  %v848_v33 = vpop.f32.mrb[27].mxu1 }
 0x2cc   :  { %v688_v34 = vadd.f32 %v687_v31, %v2653_v45  ;;  %v849_v35 = vadd.f32 %v848_v33, %v2657_v46 }
 0x2cd   :  { %931 = vst [vmem:[#allocation5 + $0x168] sm:$0xff] %v686_v29  ;;  %933 = vst [vmem:[#allocation5 + $0x178] sm:$0xff] %v847_v30 }
 0x2ce   :  { %932 = vst [vmem:[#allocation5 + $0x170] sm:$0xff] %v688_v34  ;;  %934 = vst [vmem:[#allocation5 + $0x180] sm:$0xff] %v849_v35  ;;  %v691_v37 = vpop.f32.mrb[28].mxu0  ;;  %v852_v38 = vpop.f32.mrb[28].mxu1 }
 0x2cf   :  { %v692_v39 = vadd.f32 %v691_v37, %v2645_v28  ;;  %v853_v40 = vadd.f32 %v852_v38, %v2649_v43  ;;  %v693_v41 = vpop.f32.mrb[29].mxu0  ;;  %v854_v53 = vpop.f32.mrb[29].mxu1 }
 0x2d0   :  { %v694_v2 = vadd.f32 %v693_v41, %v2653_v45  ;;  %v855_v47 = vadd.f32 %v854_v53, %v2657_v46 }
 0x2d1   :  { %935 = vst [vmem:[#allocation5 + $0x1b0] sm:$0xff] %v692_v39  ;;  %937 = vst [vmem:[#allocation5 + $0x1c0] sm:$0xff] %v853_v40 }
 0x2d2   :  { %936 = vst [vmem:[#allocation5 + $0x1b8] sm:$0xff] %v694_v2  ;;  %938 = vst [vmem:[#allocation5 + $0x1c8] sm:$0xff] %v855_v47  ;;  %v697_v49 = vpop.f32.mrb[30].mxu0  ;;  %v858_v50 = vpop.f32.mrb[30].mxu1 }
 0x2d3   :  { %v698_v51 = vadd.f32 %v697_v49, %v2645_v28  ;;  %v859_v52 = vadd.f32 %v858_v50, %v2649_v43  ;;  %v699_v54 = vpop.f32.mrb[31].mxu0  ;;  %v860_v55 = vpop.f32.mrb[31].mxu1 }
 0x2d4   :  { %v700_v56 = vadd.f32 %v699_v54, %v2653_v45  ;;  %v861_v57 = vadd.f32 %v860_v55, %v2657_v46 }
 0x2d5   :  { %939 = vst [vmem:[#allocation5 + $0x1f8] sm:$0xff] %v698_v51  ;;  %941 = vst [vmem:[#allocation5 + $0x208] sm:$0xff] %v859_v52 }
 0x2d6   :  { %940 = vst [vmem:[#allocation5 + $0x200] sm:$0xff] %v700_v56  ;;  %942 = vst [vmem:[#allocation5 + $0x210] sm:$0xff] %v861_v57  ;;  %v703_v26 = vpop.f32.mrb[32].mxu0  ;;  %v864_v59 = vpop.f32.mrb[32].mxu1 }
 0x2d7   :  { %v704_v61 = vadd.f32 %v703_v26, %v2645_v28  ;;  %v865_v63 = vadd.f32 %v864_v59, %v2649_v43  ;;  %v705_v0 = vpop.f32.mrb[33].mxu0  ;;  %v866_v1 = vpop.f32.mrb[33].mxu1  ;;  %v1039_v59 = vld [vmem:[%s2830_s6 + $0x4] sm:$0xf] }
 0x2d8   :  { %v706_v4 = vadd.f32 %v705_v0, %v2653_v45  ;;  %v867_v5 = vadd.f32 %v866_v1, %v2657_v46 }
 0x2d9   :  { %943 = vst [vmem:[#allocation5 + $0x240] sm:$0xff] %v704_v61  ;;  %945 = vst [vmem:[#allocation5 + $0x250] sm:$0xff] %v865_v63 }
 0x2da   :  { %944 = vst [vmem:[#allocation5 + $0x248] sm:$0xff] %v706_v4  ;;  %946 = vst [vmem:[#allocation5 + $0x258] sm:$0xff] %v867_v5  ;;  %v709_v6 = vpop.f32.mrb[34].mxu0  ;;  %v870_v7 = vpop.f32.mrb[34].mxu1 }
 0x2db   :  { %v710_v44 = vadd.f32 %v709_v6, %v2645_v28  ;;  %v871_v8 = vadd.f32 %v870_v7, %v2649_v43  ;;  %v711_v42 = vpop.f32.mrb[35].mxu0  ;;  %v872_v9 = vpop.f32.mrb[35].mxu1  ;;  %v2726_v6 = vrot.slane %v1039_v59, %v571_v32  ;;  %v2730_v7 = vrot.slane %v1039_v59, %v579_v48 }
 0x2dc   :  { %v712_v10 = vadd.f32 %v711_v42, %v2653_v45  ;;  %v873_v62 = vadd.f32 %v872_v9, %v2657_v46  ;;  %v2736_v42 = vrot.slane %v1039_v59, %v575_v20 }
 0x2dd   :  { %947 = vst [vmem:[#allocation5 + $0x288] sm:$0xff] %v710_v44  ;;  %949 = vst [vmem:[#allocation5 + $0x298] sm:$0xff] %v871_v8 }
 0x2de   :  { %948 = vst [vmem:[#allocation5 + $0x290] sm:$0xff] %v712_v10  ;;  %950 = vst [vmem:[#allocation5 + $0x2a0] sm:$0xff] %v873_v62  ;;  %v715_v3 = vpop.f32.mrb[36].mxu0  ;;  %v876_v60 = vpop.f32.mrb[36].mxu1 }
 0x2df   :  { %v716_v11 = vadd.f32 %v715_v3, %v2645_v28  ;;  %v877_v14 = vadd.f32 %v876_v60, %v2649_v43  ;;  %v717_v15 = vpop.f32.mrb[37].mxu0  ;;  %v878_v58 = vpop.f32.mrb[37].mxu1 }
 0x2e0   :  { %v718_v13 = vadd.f32 %v717_v15, %v2653_v45  ;;  %v879_v16 = vadd.f32 %v878_v58, %v2657_v46 }
 0x2e1   :  { %951 = vst [vmem:[#allocation5 + $0x2d0] sm:$0xff] %v716_v11  ;;  %953 = vst [vmem:[#allocation5 + $0x2e0] sm:$0xff] %v877_v14 }
 0x2e2   :  { %952 = vst [vmem:[#allocation5 + $0x2d8] sm:$0xff] %v718_v13  ;;  %954 = vst [vmem:[#allocation5 + $0x2e8] sm:$0xff] %v879_v16  ;;  %v721_v18 = vpop.f32.mrb[38].mxu0  ;;  %v882_v19 = vpop.f32.mrb[38].mxu1 }
 0x2e3   :  { %v722_v12 = vadd.f32 %v721_v18, %v2645_v28  ;;  %v883_v21 = vadd.f32 %v882_v19, %v2649_v43  ;;  %v723_v22 = vpop.f32.mrb[39].mxu0  ;;  %v884_v23 = vpop.f32.mrb[39].mxu1 }
 0x2e4   :  { %v724_v24 = vadd.f32 %v723_v22, %v2653_v45  ;;  %v885_v25 = vadd.f32 %v884_v23, %v2657_v46 }
 0x2e5   :  { %955 = vst [vmem:[#allocation5 + $0x318] sm:$0xff] %v722_v12  ;;  %957 = vst [vmem:[#allocation5 + $0x328] sm:$0xff] %v883_v21 }
 0x2e6   :  { %956 = vst [vmem:[#allocation5 + $0x320] sm:$0xff] %v724_v24  ;;  %958 = vst [vmem:[#allocation5 + $0x330] sm:$0xff] %v885_v25  ;;  %v727_v27 = vpop.f32.mrb[40].mxu0  ;;  %v888_v29 = vpop.f32.mrb[40].mxu1 }
 0x2e7   :  { %v728_v30 = vadd.f32 %v727_v27, %v2645_v28  ;;  %v889_v31 = vadd.f32 %v888_v29, %v2649_v43  ;;  %v729_v33 = vpop.f32.mrb[41].mxu0  ;;  %v890_v34 = vpop.f32.mrb[41].mxu1 }
 0x2e8   :  { %v730_v35 = vadd.f32 %v729_v33, %v2653_v45  ;;  %v891_v37 = vadd.f32 %v890_v34, %v2657_v46 }
 0x2e9   :  { %959 = vst [vmem:[#allocation5 + $0x360] sm:$0xff] %v728_v30  ;;  %961 = vst [vmem:[#allocation5 + $0x370] sm:$0xff] %v889_v31 }
 0x2ea   :  { %960 = vst [vmem:[#allocation5 + $0x368] sm:$0xff] %v730_v35  ;;  %962 = vst [vmem:[#allocation5 + $0x378] sm:$0xff] %v891_v37  ;;  %v733_v38 = vpop.f32.mrb[42].mxu0  ;;  %v894_v39 = vpop.f32.mrb[42].mxu1 }
 0x2eb   :  { %v734_v40 = vadd.f32 %v733_v38, %v2645_v28  ;;  %v895_v41 = vadd.f32 %v894_v39, %v2649_v43  ;;  %v735_v53 = vpop.f32.mrb[43].mxu0  ;;  %v896_v2 = vpop.f32.mrb[43].mxu1 }
 0x2ec   :  { %v736_v47 = vadd.f32 %v735_v53, %v2653_v45  ;;  %v897_v49 = vadd.f32 %v896_v2, %v2657_v46 }
 0x2ed   :  { %963 = vst [vmem:[#allocation5 + $0x3a8] sm:$0xff] %v734_v40  ;;  %965 = vst [vmem:[#allocation5 + $0x3b8] sm:$0xff] %v895_v41 }
 0x2ee   :  { %964 = vst [vmem:[#allocation5 + $0x3b0] sm:$0xff] %v736_v47  ;;  %966 = vst [vmem:[#allocation5 + $0x3c0] sm:$0xff] %v897_v49  ;;  %v739_v50 = vpop.f32.mrb[44].mxu0  ;;  %v900_v51 = vpop.f32.mrb[44].mxu1 }
 0x2ef   :  { %v740_v52 = vadd.f32 %v739_v50, %v2645_v28  ;;  %v901_v54 = vadd.f32 %v900_v51, %v2649_v43  ;;  %v741_v55 = vpop.f32.mrb[45].mxu0  ;;  %v902_v56 = vpop.f32.mrb[45].mxu1 }
 0x2f0   :  { %v742_v57 = vadd.f32 %v741_v55, %v2653_v45  ;;  %v903_v26 = vadd.f32 %v902_v56, %v2657_v46 }
 0x2f1   :  { %967 = vst [vmem:[#allocation5 + $0x3f0] sm:$0xff] %v740_v52  ;;  %969 = vst [vmem:[#allocation5 + $0x400] sm:$0xff] %v901_v54 }
 0x2f2   :  { %968 = vst [vmem:[#allocation5 + $0x3f8] sm:$0xff] %v742_v57  ;;  %970 = vst [vmem:[#allocation5 + $0x408] sm:$0xff] %v903_v26  ;;  %v745_v61 = vpop.f32.mrb[46].mxu0  ;;  %v906_v63 = vpop.f32.mrb[46].mxu1 }
 0x2f3   :  { %v746_v0 = vadd.f32 %v745_v61, %v2645_v28  ;;  %v907_v1 = vadd.f32 %v906_v63, %v2649_v43  ;;  %v747_v4 = vpop.f32.mrb[47].mxu0  ;;  %v908_v5 = vpop.f32.mrb[47].mxu1  ;;  %v2740_v28 = vrot.slane %v1039_v59, %v583_v36 }
 0x2f4   :  { %v748_v44 = vadd.f32 %v747_v4, %v2653_v45  ;;  %v909_v8 = vadd.f32 %v908_v5, %v2657_v46 }
 0x2f5   :  { %971 = vst [vmem:[#allocation5 + $0x438] sm:$0xff] %v746_v0  ;;  %973 = vst [vmem:[#allocation5 + $0x448] sm:$0xff] %v907_v1 }
 0x2f6   :  { %972 = vst [vmem:[#allocation5 + $0x440] sm:$0xff] %v748_v44  ;;  %974 = vst [vmem:[#allocation5 + $0x450] sm:$0xff] %v909_v8  ;;  %v1127_v32 = vpop.f32.mrb[48].mxu0  ;;  %v1288_v43 = vpop.f32.mrb[48].mxu1 }
 0x2f7   :  { %v1128_v48 = vadd.f32 %v1127_v32, %v2726_v6  ;;  %v1289_v45 = vadd.f32 %v1288_v43, %v2730_v7  ;;  %v1129_v9 = vpop.f32.mrb[49].mxu0  ;;  %v1290_v46 = vpop.f32.mrb[49].mxu1 }
 0x2f8   :  { %v1130_v10 = vadd.f32 %v1129_v9, %v2736_v42  ;;  %v1291_v20 = vadd.f32 %v1290_v46, %v2740_v28 }
 0x2f9   :  { %1383 = vst [vmem:[#allocation5 + $0x20] sm:$0xff] %v1128_v48  ;;  %1385 = vst [vmem:[#allocation5 + $0x30] sm:$0xff] %v1289_v45 }
 0x2fa   :  { %1384 = vst [vmem:[#allocation5 + $0x28] sm:$0xff] %v1130_v10  ;;  %1386 = vst [vmem:[#allocation5 + $0x38] sm:$0xff] %v1291_v20  ;;  %v1133_v17 = vpop.f32.mrb[50].mxu0  ;;  %v1294_v36 = vpop.f32.mrb[50].mxu1 }
 0x2fb   :  { %v1134_v62 = vadd.f32 %v1133_v17, %v2726_v6  ;;  %v1295_v3 = vadd.f32 %v1294_v36, %v2730_v7  ;;  %v1135_v60 = vpop.f32.mrb[51].mxu0  ;;  %v1296_v11 = vpop.f32.mrb[51].mxu1 }
 0x2fc   :  { %v1136_v14 = vadd.f32 %v1135_v60, %v2736_v42  ;;  %v1297_v15 = vadd.f32 %v1296_v11, %v2740_v28 }
 0x2fd   :  { %1387 = vst [vmem:[#allocation5 + $0x68] sm:$0xff] %v1134_v62  ;;  %1389 = vst [vmem:[#allocation5 + $0x78] sm:$0xff] %v1295_v3 }
 0x2fe   :  { %1388 = vst [vmem:[#allocation5 + $0x70] sm:$0xff] %v1136_v14  ;;  %1390 = vst [vmem:[#allocation5 + $0x80] sm:$0xff] %v1297_v15  ;;  %v1139_v58 = vpop.f32.mrb[52].mxu0  ;;  %v1300_v13 = vpop.f32.mrb[52].mxu1 }
 0x2ff   :  { %v1140_v16 = vadd.f32 %v1139_v58, %v2726_v6  ;;  %v1301_v18 = vadd.f32 %v1300_v13, %v2730_v7  ;;  %v1141_v19 = vpop.f32.mrb[53].mxu0  ;;  %v1302_v12 = vpop.f32.mrb[53].mxu1 }
 0x300   :  { %v1142_v21 = vadd.f32 %v1141_v19, %v2736_v42  ;;  %v1303_v22 = vadd.f32 %v1302_v12, %v2740_v28 }
 0x301   :  { %1391 = vst [vmem:[#allocation5 + $0xb0] sm:$0xff] %v1140_v16  ;;  %1393 = vst [vmem:[#allocation5 + $0xc0] sm:$0xff] %v1301_v18 }
 0x302   :  { %1392 = vst [vmem:[#allocation5 + $0xb8] sm:$0xff] %v1142_v21  ;;  %1394 = vst [vmem:[#allocation5 + $0xc8] sm:$0xff] %v1303_v22  ;;  %v1145_v23 = vpop.f32.mrb[54].mxu0  ;;  %v1306_v24 = vpop.f32.mrb[54].mxu1 }
 0x303   :  { %v1146_v25 = vadd.f32 %v1145_v23, %v2726_v6  ;;  %v1307_v27 = vadd.f32 %v1306_v24, %v2730_v7  ;;  %v1147_v29 = vpop.f32.mrb[55].mxu0  ;;  %v1308_v30 = vpop.f32.mrb[55].mxu1 }
 0x304   :  { %v1148_v31 = vadd.f32 %v1147_v29, %v2736_v42  ;;  %v1309_v33 = vadd.f32 %v1308_v30, %v2740_v28 }
 0x305   :  { %1395 = vst [vmem:[#allocation5 + $0xf8] sm:$0xff] %v1146_v25  ;;  %1397 = vst [vmem:[#allocation5 + $0x108] sm:$0xff] %v1307_v27 }
 0x306   :  { %1396 = vst [vmem:[#allocation5 + $0x100] sm:$0xff] %v1148_v31  ;;  %1398 = vst [vmem:[#allocation5 + $0x110] sm:$0xff] %v1309_v33  ;;  %v1151_v34 = vpop.f32.mrb[56].mxu0  ;;  %v1312_v35 = vpop.f32.mrb[56].mxu1 }
 0x307   :  { %v1152_v37 = vadd.f32 %v1151_v34, %v2726_v6  ;;  %v1313_v38 = vadd.f32 %v1312_v35, %v2730_v7  ;;  %v1153_v39 = vpop.f32.mrb[57].mxu0  ;;  %v1314_v40 = vpop.f32.mrb[57].mxu1 }
 0x308   :  { %v1154_v41 = vadd.f32 %v1153_v39, %v2736_v42  ;;  %v1315_v53 = vadd.f32 %v1314_v40, %v2740_v28 }
 0x309   :  { %1399 = vst [vmem:[#allocation5 + $0x140] sm:$0xff] %v1152_v37  ;;  %1401 = vst [vmem:[#allocation5 + $0x150] sm:$0xff] %v1313_v38 }
 0x30a   :  { %1400 = vst [vmem:[#allocation5 + $0x148] sm:$0xff] %v1154_v41  ;;  %1402 = vst [vmem:[#allocation5 + $0x158] sm:$0xff] %v1315_v53  ;;  %v1157_v2 = vpop.f32.mrb[58].mxu0  ;;  %v1318_v47 = vpop.f32.mrb[58].mxu1 }
 0x30b   :  { %v1158_v49 = vadd.f32 %v1157_v2, %v2726_v6  ;;  %v1319_v50 = vadd.f32 %v1318_v47, %v2730_v7  ;;  %v1159_v51 = vpop.f32.mrb[59].mxu0  ;;  %v1320_v52 = vpop.f32.mrb[59].mxu1 }
 0x30c   :  { %v1160_v54 = vadd.f32 %v1159_v51, %v2736_v42  ;;  %v1321_v55 = vadd.f32 %v1320_v52, %v2740_v28 }
 0x30d   :  { %1403 = vst [vmem:[#allocation5 + $0x188] sm:$0xff] %v1158_v49  ;;  %1405 = vst [vmem:[#allocation5 + $0x198] sm:$0xff] %v1319_v50 }
 0x30e   :  { %1404 = vst [vmem:[#allocation5 + $0x190] sm:$0xff] %v1160_v54  ;;  %1406 = vst [vmem:[#allocation5 + $0x1a0] sm:$0xff] %v1321_v55  ;;  %v1163_v56 = vpop.f32.mrb[60].mxu0  ;;  %v1324_v57 = vpop.f32.mrb[60].mxu1 }
 0x30f   :  { %v1164_v26 = vadd.f32 %v1163_v56, %v2726_v6  ;;  %v1325_v59 = vadd.f32 %v1324_v57, %v2730_v7  ;;  %v1165_v61 = vpop.f32.mrb[61].mxu0  ;;  %v1326_v63 = vpop.f32.mrb[61].mxu1 }
 0x310   :  { %v1166_v0 = vadd.f32 %v1165_v61, %v2736_v42  ;;  %v1327_v1 = vadd.f32 %v1326_v63, %v2740_v28 }
 0x311   :  { %1407 = vst [vmem:[#allocation5 + $0x1d0] sm:$0xff] %v1164_v26  ;;  %1409 = vst [vmem:[#allocation5 + $0x1e0] sm:$0xff] %v1325_v59 }
 0x312   :  { %1408 = vst [vmem:[#allocation5 + $0x1d8] sm:$0xff] %v1166_v0  ;;  %1410 = vst [vmem:[#allocation5 + $0x1e8] sm:$0xff] %v1327_v1  ;;  %v1169_v4 = vpop.f32.mrb[62].mxu0  ;;  %v1330_v5 = vpop.f32.mrb[62].mxu1 }
 0x313   :  { %v1170_v44 = vadd.f32 %v1169_v4, %v2726_v6  ;;  %v1331_v8 = vadd.f32 %v1330_v5, %v2730_v7  ;;  %v1171_v32 = vpop.f32.mrb[63].mxu0  ;;  %v1332_v43 = vpop.f32.mrb[63].mxu1 }
 0x314   :  { %v1172_v48 = vadd.f32 %v1171_v32, %v2736_v42  ;;  %v1333_v45 = vadd.f32 %v1332_v43, %v2740_v28 }
 0x315   :  { %1411 = vst [vmem:[#allocation5 + $0x218] sm:$0xff] %v1170_v44  ;;  %1413 = vst [vmem:[#allocation5 + $0x228] sm:$0xff] %v1331_v8 }
 0x316   :  { %1412 = vst [vmem:[#allocation5 + $0x220] sm:$0xff] %v1172_v48  ;;  %1414 = vst [vmem:[#allocation5 + $0x230] sm:$0xff] %v1333_v45  ;;  %v1175_v9 = vpop.f32.mrb[64].mxu0  ;;  %v1336_v46 = vpop.f32.mrb[64].mxu1 }
 0x317   :  { %v1176_v10 = vadd.f32 %v1175_v9, %v2726_v6  ;;  %v1337_v20 = vadd.f32 %v1336_v46, %v2730_v7  ;;  %v1177_v17 = vpop.f32.mrb[65].mxu0  ;;  %v1338_v36 = vpop.f32.mrb[65].mxu1 }
 0x318   :  { %v1178_v62 = vadd.f32 %v1177_v17, %v2736_v42  ;;  %v1339_v3 = vadd.f32 %v1338_v36, %v2740_v28  ;;  %v1682_v17 = vld [vmem:[%s2830_s6 + $0x8] ss:$0 sm:$0xff]  ;;  %s2208_s6 = smov [#allocation5]  }
 0x319   :  { %1415 = vst [vmem:[#allocation5 + $0x260] sm:$0xff] %v1176_v10  ;;  %1417 = vst [vmem:[#allocation5 + $0x270] sm:$0xff] %v1337_v20  ;;  %s1636_s29 = sshll.u32 %s2208_s6, 4  ;;  %s1637_s29 = int_to_ptr.vmem [resolvable:$true] %s1636_s29 }
 0x31a   :  { %1416 = vst [vmem:[#allocation5 + $0x268] sm:$0xff] %v1178_v62  ;;  %1418 = vst [vmem:[#allocation5 + $0x278] sm:$0xff] %v1339_v3  ;;  %v1181_v60 = vpop.f32.mrb[66].mxu0  ;;  %v1342_v11 = vpop.f32.mrb[66].mxu1  ;;  %s2178_s30 = scalar_lea.vmem %s1637_s29, 18432  ;;  %p2183_p9 = scmp.lt.s32.totalorder %s1637_s29, %s1637_s29 }
 0x31b   :  { %v1182_v14 = vadd.f32 %v1181_v60, %v2726_v6  ;;  %v1343_v15 = vadd.f32 %v1342_v11, %v2730_v7  ;;  %v1183_v58 = vpop.f32.mrb[67].mxu0  ;;  %v1344_v13 = vpop.f32.mrb[67].mxu1  ;;  %p2179_p8 = scmp.ne.s32.totalorder %s1637_s29, %s2178_s30  ;;  %p2184_p10 = scmp.lt.s32.totalorder %s2178_s30, %s2178_s30 }
 0x31c   :  { %v1184_v16 = vadd.f32 %v1183_v58, %v2736_v42  ;;  %v1345_v18 = vadd.f32 %v1344_v13, %v2740_v28 }
 0x31d   :  { %1419 = vst [vmem:[#allocation5 + $0x2a8] sm:$0xff] %v1182_v14  ;;  %1421 = vst [vmem:[#allocation5 + $0x2b8] sm:$0xff] %v1343_v15  ;;  %p2185_p11 = por %p2184_p10, %p2183_p9 }
 0x31e   :  { %1420 = vst [vmem:[#allocation5 + $0x2b0] sm:$0xff] %v1184_v16  ;;  %1422 = vst [vmem:[#allocation5 + $0x2c0] sm:$0xff] %v1345_v18  ;;  %v1187_v19 = vpop.f32.mrb[68].mxu0  ;;  %v1348_v12 = vpop.f32.mrb[68].mxu1 }
 0x31f   :  { %v1188_v21 = vadd.f32 %v1187_v19, %v2726_v6  ;;  %v1349_v22 = vadd.f32 %v1348_v12, %v2730_v7  ;;  %v1189_v23 = vpop.f32.mrb[69].mxu0  ;;  %v1350_v24 = vpop.f32.mrb[69].mxu1  ;;  %p2186_p12 = pnand %p2185_p11, %p2179_p8 }
 0x320   :  { %v1190_v25 = vadd.f32 %v1189_v23, %v2736_v42  ;;  %v1351_v27 = vadd.f32 %v1350_v24, %v2740_v28 }
 0x321   :  { %1423 = vst [vmem:[#allocation5 + $0x2f0] sm:$0xff] %v1188_v21  ;;  %1425 = vst [vmem:[#allocation5 + $0x300] sm:$0xff] %v1349_v22 }
 0x322   :  { %1424 = vst [vmem:[#allocation5 + $0x2f8] sm:$0xff] %v1190_v25  ;;  %1426 = vst [vmem:[#allocation5 + $0x308] sm:$0xff] %v1351_v27  ;;  %v1193_v29 = vpop.f32.mrb[70].mxu0  ;;  %v1354_v30 = vpop.f32.mrb[70].mxu1 }
 0x323   :  { %v1194_v31 = vadd.f32 %v1193_v29, %v2726_v6  ;;  %v1355_v33 = vadd.f32 %v1354_v30, %v2730_v7  ;;  %v1195_v34 = vpop.f32.mrb[71].mxu0  ;;  %v1356_v35 = vpop.f32.mrb[71].mxu1 }
 0x324   :  { %v1196_v37 = vadd.f32 %v1195_v34, %v2736_v42  ;;  %v1357_v38 = vadd.f32 %v1356_v35, %v2740_v28 }
 0x325   :  { %1427 = vst [vmem:[#allocation5 + $0x338] sm:$0xff] %v1194_v31  ;;  %1429 = vst [vmem:[#allocation5 + $0x348] sm:$0xff] %v1355_v33 }
 0x326   :  { %1428 = vst [vmem:[#allocation5 + $0x340] sm:$0xff] %v1196_v37  ;;  %1430 = vst [vmem:[#allocation5 + $0x350] sm:$0xff] %v1357_v38  ;;  %v1199_v39 = vpop.f32.mrb[72].mxu0  ;;  %v1360_v40 = vpop.f32.mrb[72].mxu1 }
 0x327   :  { %v1200_v41 = vadd.f32 %v1199_v39, %v2726_v6  ;;  %v1361_v53 = vadd.f32 %v1360_v40, %v2730_v7  ;;  %v1201_v2 = vpop.f32.mrb[73].mxu0  ;;  %v1362_v47 = vpop.f32.mrb[73].mxu1 }
 0x328   :  { %v1202_v49 = vadd.f32 %v1201_v2, %v2736_v42  ;;  %v1363_v50 = vadd.f32 %v1362_v47, %v2740_v28 }
 0x329   :  { %1431 = vst [vmem:[#allocation5 + $0x380] sm:$0xff] %v1200_v41  ;;  %1433 = vst [vmem:[#allocation5 + $0x390] sm:$0xff] %v1361_v53 }
 0x32a   :  { %1432 = vst [vmem:[#allocation5 + $0x388] sm:$0xff] %v1202_v49  ;;  %1434 = vst [vmem:[#allocation5 + $0x398] sm:$0xff] %v1363_v50  ;;  %v1205_v51 = vpop.f32.mrb[74].mxu0  ;;  %v1366_v52 = vpop.f32.mrb[74].mxu1 }
 0x32b   :  { %v1206_v54 = vadd.f32 %v1205_v51, %v2726_v6  ;;  %v1367_v55 = vadd.f32 %v1366_v52, %v2730_v7  ;;  %v1207_v56 = vpop.f32.mrb[75].mxu0  ;;  %v1368_v57 = vpop.f32.mrb[75].mxu1 }
 0x32c   :  { %v1208_v26 = vadd.f32 %v1207_v56, %v2736_v42  ;;  %v1369_v59 = vadd.f32 %v1368_v57, %v2740_v28 }
 0x32d   :  { %1435 = vst [vmem:[#allocation5 + $0x3c8] sm:$0xff] %v1206_v54  ;;  %1437 = vst [vmem:[#allocation5 + $0x3d8] sm:$0xff] %v1367_v55 }
 0x32e   :  { %1436 = vst [vmem:[#allocation5 + $0x3d0] sm:$0xff] %v1208_v26  ;;  %1438 = vst [vmem:[#allocation5 + $0x3e0] sm:$0xff] %v1369_v59  ;;  %v1211_v61 = vpop.f32.mrb[76].mxu0  ;;  %v1372_v63 = vpop.f32.mrb[76].mxu1 }
 0x32f   :  { %v1212_v0 = vadd.f32 %v1211_v61, %v2726_v6  ;;  %v1373_v1 = vadd.f32 %v1372_v63, %v2730_v7  ;;  %v1213_v4 = vpop.f32.mrb[77].mxu0  ;;  %v1374_v5 = vpop.f32.mrb[77].mxu1 }
 0x330   :  { %v1214_v44 = vadd.f32 %v1213_v4, %v2736_v42  ;;  %v1375_v8 = vadd.f32 %v1374_v5, %v2740_v28 }
 0x331   :  { %1439 = vst [vmem:[#allocation5 + $0x410] sm:$0xff] %v1212_v0  ;;  %1441 = vst [vmem:[#allocation5 + $0x420] sm:$0xff] %v1373_v1 }
 0x332   :  { %1440 = vst [vmem:[#allocation5 + $0x418] sm:$0xff] %v1214_v44  ;;  %1442 = vst [vmem:[#allocation5 + $0x428] sm:$0xff] %v1375_v8  ;;  %v1217_v32 = vpop.f32.mrb[78].mxu0  ;;  %v1378_v43 = vpop.f32.mrb[78].mxu1 }
 0x333   :  { %v1218_v48 = vadd.f32 %v1217_v32, %v2726_v6  ;;  %v1379_v45 = vadd.f32 %v1378_v43, %v2730_v7  ;;  %v1219_v9 = vpop.f32.mrb[79].mxu0  ;;  %v1380_v46 = vpop.f32.mrb[79].mxu1 }
 0x334   :  { %v1220_v10 = vadd.f32 %v1219_v9, %v2736_v42  ;;  %v1381_v20 = vadd.f32 %v1380_v46, %v2740_v28 }
 0x335   :  { %1443 = vst [vmem:[#allocation5 + $0x458] sm:$0xff] %v1218_v48  ;;  %1445 = vst [vmem:[#allocation5 + $0x468] sm:$0xff] %v1379_v45 }
 0x336   :  { %1444 = vst [vmem:[#allocation5 + $0x460] sm:$0xff] %v1220_v10  ;;  %1446 = vst [vmem:[#allocation5 + $0x470] sm:$0xff] %v1381_v20  ;;  %v1865_v36 = vpop.f32.mrb[80].mxu0  ;;  %v1880_v62 = vpop.f32.mrb[80].mxu1 }
 0x337   :  { %v1542_v3 = vadd.f32 %v1865_v36, %v1682_v17  ;;  %v1592_v6 = vadd.f32 %v1880_v62, %v1682_v17  ;;  %v1536_v60 = vpop.f32.mrb[81].mxu0  ;;  %v1586_v7 = vpop.f32.mrb[81].mxu1 }
 0x338   :  { %v1537_v11 = vadd.f32 %v1682_v17, %v1536_v60  ;;  %v1587_v14 = vadd.f32 %v1682_v17, %v1586_v7 }
 0x339   :  { %1616 = vst [vmem:[#allocation5 + $0x88] sm:$0xff] %v1542_v3  ;;  %1626 = vst [vmem:[#allocation5 + $0x358] sm:$0xff] %v1592_v6 }
 0x33a   :  { %1615 = vst [vmem:[#allocation5 + $0x40] sm:$0xff] %v1537_v11  ;;  %1625 = vst [vmem:[#allocation5 + $0x310] sm:$0xff] %v1587_v14  ;;  %v1868_v42 = vpop.f32.mrb[82].mxu0  ;;  %v1883_v28 = vpop.f32.mrb[82].mxu1 }
 0x33b   :  { %v1552_v15 = vadd.f32 %v1868_v42, %v1682_v17  ;;  %v1602_v58 = vadd.f32 %v1883_v28, %v1682_v17  ;;  %v1546_v13 = vpop.f32.mrb[83].mxu0  ;;  %v1596_v16 = vpop.f32.mrb[83].mxu1 }
 0x33c   :  { %v1547_v18 = vadd.f32 %v1682_v17, %v1546_v13  ;;  %v1597_v19 = vadd.f32 %v1682_v17, %v1596_v16 }
 0x33d   :  { %1618 = vst [vmem:[#allocation5 + $0x118] sm:$0xff] %v1552_v15  ;;  %1628 = vst [vmem:[#allocation5 + $0x3e8] sm:$0xff] %v1602_v58 }
 0x33e   :  { %1617 = vst [vmem:[#allocation5 + $0xd0] sm:$0xff] %v1547_v18  ;;  %1627 = vst [vmem:[#allocation5 + $0x3a0] sm:$0xff] %v1597_v19  ;;  %v1871_v12 = vpop.f32.mrb[84].mxu0  ;;  %v1886_v21 = vpop.f32.mrb[84].mxu1 }
 0x33f   :  { %v1562_v22 = vadd.f32 %v1871_v12, %v1682_v17  ;;  %v1612_v23 = vadd.f32 %v1886_v21, %v1682_v17  ;;  %v1556_v24 = vpop.f32.mrb[85].mxu0  ;;  %v1606_v25 = vpop.f32.mrb[85].mxu1 }
 0x340   :  { %v1557_v27 = vadd.f32 %v1682_v17, %v1556_v24  ;;  %v1607_v29 = vadd.f32 %v1682_v17, %v1606_v25 }
 0x341   :  { %1620 = vst [vmem:[#allocation5 + $0x1a8] sm:$0xff] %v1562_v22  ;;  %1630 = vst [vmem:[#allocation5 + $0x478] sm:$0xff] %v1612_v23 }
 0x342   :  { %1619 = vst [vmem:[#allocation5 + $0x160] sm:$0xff] %v1557_v27  ;;  %1629 = vst [vmem:[#allocation5 + $0x430] sm:$0xff] %v1607_v29  ;;  %v1874_v30 = vpop.f32.mrb[86].mxu0 }
 0x343   :  { %v1572_v31 = vadd.f32 %v1874_v30, %v1682_v17  ;;  %v1566_v33 = vpop.f32.mrb[87].mxu0 }
 0x344   :  { %v1567_v34 = vadd.f32 %v1682_v17, %v1566_v33 }
 0x345   :  { %1622 = vst [vmem:[#allocation5 + $0x238] sm:$0xff] %v1572_v31 }
 0x346   :  { %1621 = vst [vmem:[#allocation5 + $0x1f0] sm:$0xff] %v1567_v34  ;;  %v1877_v35 = vpop.f32.mrb[88].mxu0 }
 0x347   :  { %v1582_v37 = vadd.f32 %v1877_v35, %v1682_v17  ;;  %v1576_v38 = vpop.f32.mrb[89].mxu0 }
 0x348   :  { %v1577_v39 = vadd.f32 %v1682_v17, %v1576_v38 }
 0x349   :  { %1624 = vst [vmem:[#allocation5 + $0x2c8] sm:$0xff] %v1582_v37 }
 0x34a   :  { %1623 = vst [vmem:[#allocation5 + $0x280] sm:$0xff] %v1577_v39 }
 0x34b   :  { %2189 = shalt.err (!%p2186_p12)
}
 0x34c   :  { %s2190_s10 = scalar_lea.hbm %s2831_s7, 18432 }
 0x34d   :  { %p2191_p13 = scmp.ne.s32.totalorder %s2831_s7, %s2190_s10  ;;  %p2194_p0 = scmp.lt.u32.totalorder %s2190_s10, %s2831_s7 }
 0x34f   :  { %p2196_p1 = pnand %p2194_p0, %p2191_p13 }
 0x351   :  { %2199 = shalt.err (!%p2196_p1)
}
 0x352   :  { %1642 = dma.vmem_to_hbm [thread:$0]  %s1637_s29, 18432, %s2831_s7, [#allocation4], %s2205_s11, %s2205_s11, %s2206_s12  }
 0x353   :  { %2202 = dma.done.wait [#allocation4], 18432  }
 0x354   :  { %2203 = vsyncadd [#allocation4], 4294948864 }
 0x355   :  { %1646 = vsyncpa [#allocation3], 1 }
 0x356   :  { %1647 = vsyncpa [#allocation4], 1 }

</bundles_post_ra>
